<compile_context>
chip_gen: v6e
topology: v6e:2x2x1
jax: 0.10.0
libtpu: 0.0.40
codegen_flags: <defaults>
</compile_context>

<pallas_src>
import jax
import jax.numpy as jnp
import numpy as np
from jax.experimental import pallas as pl
from jax.experimental.pallas import tpu as pltpu

BN_EPS = 1e-5  # PyTorch BatchNorm2d default


# ---------------------------------------------------------------------------
# Parameter packing (tiny, host/XLA-side glue; can be hoisted/cached for inference)
# ---------------------------------------------------------------------------
def _toeplitz_weight(w, win_raw, stride=1):
    """Pack (Cout, Cin, kh, kw) conv weights into (kh*Cin*win_raw, Cout*wout).

    The packed matrix consumes an LHS whose lane index is
        d*(Cin*win_raw) + c*win_raw + u
    holding input row (r+d), channel c, *raw* width position u; only positions
    u = stride*j' carry data (stride=2 folds the column-selection of a preceding
    2x2 max-pool into the weight: rows at odd u are zero).
      M[d*Cin*win_raw + c*win_raw + u, co*wout + j] = w[co, c, d, u/stride - j]
    """
    cout, cin, kh, kw = w.shape
    win = win_raw // stride
    wout = win - kw + 1
    # ind[k, u, j] = 1  iff  u == stride*(j + k)
    ind = (np.arange(win_raw)[None, :, None] ==
           stride * (np.arange(wout)[None, None, :] + np.arange(kw)[:, None, None])
           ).astype(np.float32)                                    # (kw, win_raw, wout)
    m = jnp.einsum("ocdk,kuj->dcuoj", w.astype(jnp.float32), ind)  # (kh,cin,win_raw,cout,wout)
    return m.reshape(kh * cin * win_raw, cout * wout)


def _pool_select_matrix(c, w_in):
    """(c*w_in, c*(w_in//2)) 0/1 matrix selecting even width positions (per channel)."""
    w_out = w_in // 2
    s = np.zeros((c * w_in, c * w_out), np.float32)
    for ci in range(c):
        for j in range(w_out):
            s[ci * w_in + 2 * j, ci * w_out + j] = 1.0
    return jnp.asarray(s)


def _bn_affine(gamma, beta, mean, var):
    scale = gamma * jax.lax.rsqrt(var + BN_EPS)
    shift = beta - mean * scale
    return scale, shift


def _epilogue_rows(bias, scale, shift, wout):
    """(3, Cout*wout): row0=bias, row1=BN scale, row2=BN shift, channel-major lanes."""
    return jnp.stack([jnp.repeat(bias.astype(jnp.float32), wout),
                      jnp.repeat(scale.astype(jnp.float32), wout),
                      jnp.repeat(shift.astype(jnp.float32), wout)], axis=0)


# ---------------------------------------------------------------------------
# Fused forward pass
# ---------------------------------------------------------------------------
def lenet_feature_extractor(x_nchw, params, *, batch_tile=8):
    """Forward pass with the semantics of LeNetFeatureExtractor.forward (eval mode)."""
    N, Cin, H, W = x_nchw.shape
    C1, _, K, _ = params["conv1_w"].shape        # 6, Cin, 5, 5
    C2 = params["conv2_w"].shape[0]              # 16
    Ho1, Wo1 = H - K + 1, W - K + 1              # conv1 output
    Hp1, Wp1 = Ho1 // 2, Wo1 // 2                # pool1 output
    Ho2, Wo2 = Hp1 - K + 1, Wp1 - K + 1          # conv2 output
    Hp2, Wp2 = Ho2 // 2, Wo2 // 2                # pool2 output
    assert Ho1 >= 2 and Ho2 >= 2 and Hp2 >= 1 and Wp2 >= 1
    assert Ho1 % 2 == 0 and Wo1 % 2 == 0 and Ho2 % 2 == 0 and Wo2 % 2 == 0, \
        "fused pooling path assumes even conv output dims (true for LeNet sizes)"

    TB = int(batch_tile)
    num_tiles = -(-N // TB)
    N_pad = num_tiles * TB
    CW = Cin * W                 # conv1 lane width per shifted slab
    L1 = C1 * Wo1                # conv1 output lane width (channel-major)
    L2 = C2 * Wo2                # conv2 output lane width (channel-major)
    FEAT = Hp2 * C2 * Wp2        # features per image

    # ---- pack weights / BN params (small; VMEM-resident across the grid) ----
    B1 = _toeplitz_weight(params["conv1_w"], W, stride=1)      # (K*Cin*W,   C1*Wo1)
    B2 = _toeplitz_weight(params["conv2_w"], Wo1, stride=2)    # (K*C1*Wo1,  C2*Wo2)  pool1-select folded in
    sc1, sh1 = _bn_affine(params["bn1_gamma"], params["bn1_beta"],
                          params["bn1_mean"], params["bn1_var"])
    sc2, sh2 = _bn_affine(params["bn2_gamma"], params["bn2_beta"],
                          params["bn2_mean"], params["bn2_var"])
    prm1 = _epilogue_rows(params["conv1_b"], sc1, sh1, Wo1)    # (3, C1*Wo1)
    prm2 = _epilogue_rows(params["conv2_b"], sc2, sh2, Wo2)    # (3, C2*Wo2)
    S2 = _pool_select_matrix(C2, Wo2)                          # (C2*Wo2, C2*Wp2)

    # Input laid out as (N, H, Cin*W): image rows on sublanes, channel-major lanes.
    # (For a real inference pipeline, keep inputs pre-laid-out in this shape instead
    #  of paying this transpose on every call.)
    x_l = jnp.transpose(x_nchw, (0, 2, 1, 3)).reshape(N, H, CW).astype(jnp.float32)
    if N_pad != N:
        x_l = jnp.pad(x_l, ((0, N_pad - N), (0, 0), (0, 0)))

    def kernel(x_ref, b1_ref, prm1_ref, b2_ref, prm2_ref, s2_ref, out_ref):
        # ---- conv1: one MXU matmul for all TB images -------------------------
        # lhs1 row (i, r): lane-concat of the K shifted rows of image i.
        lhs1 = jnp.concatenate(
            [jnp.concatenate([x_ref[i][d:d + Ho1, :] for d in range(K)], axis=1)
             for i in range(TB)], axis=0)                       # (TB*Ho1, K*Cin*W)
        acc1 = jnp.dot(lhs1, b1_ref[...], preferred_element_type=jnp.float32)
        v1 = (jnp.maximum(acc1 + prm1_ref[0:1, :], 0.0) * prm1_ref[1:2, :]
              + prm1_ref[2:3, :])                               # (TB*Ho1, C1*Wo1)

        # ---- pool1 (2x2, floor), vectorised over the whole tile ---------------
        # width candidates: max(x[w], x[w+1]) is valid at even w (odd w rows of B2
        # are zero, so the wrap/odd-lane garbage never contributes).
        wc1 = jnp.maximum(v1, jnp.concatenate([v1[:, 1:], v1[:, :1]], axis=1))
        rc1 = jnp.maximum(wc1[:-1, :], wc1[1:, :])              # (TB*Ho1-1, C1*Wo1)
        # pooled (un-compacted) row (image i, row r) lives at rc1[i*Ho1 + 2*r].

        # ---- conv2: gather pooled rows into one MXU matmul --------------------
        lhs2 = jnp.concatenate(
            [jnp.concatenate(
                [rc1[i * Ho1 + 2 * (r + d):i * Ho1 + 2 * (r + d) + 1, :]
                 for d in range(K)], axis=1)
             for i in range(TB) for r in range(Ho2)], axis=0)   # (TB*Ho2, K*C1*Wo1)
        acc2 = jnp.dot(lhs2, b2_ref[...], preferred_element_type=jnp.float32)
        v2 = (jnp.maximum(acc2 + prm2_ref[0:1, :], 0.0) * prm2_ref[1:2, :]
              + prm2_ref[2:3, :])                               # (TB*Ho2, C2*Wo2)

        # ---- pool2 + lane compaction (tiny selection matmul) ------------------
        wc2 = jnp.maximum(v2, jnp.concatenate([v2[:, 1:], v2[:, :1]], axis=1))
        rc2 = jnp.maximum(wc2[:-1, :], wc2[1:, :])              # (TB*Ho2-1, C2*Wo2)
        sel = jnp.concatenate(
            [rc2[i * Ho2 + 2 * r:i * Ho2 + 2 * r + 1, :]
             for i in range(TB) for r in range(Hp2)], axis=0)   # (TB*Hp2, C2*Wo2)
        p2 = jnp.dot(sel, s2_ref[...],
                     preferred_element_type=jnp.float32)        # (TB*Hp2, C2*Wp2)

        # ---- lane-dense output: ONE (1, TB*FEAT) row per grid step ------------
        out_ref[...] = jnp.concatenate(
            [p2[t:t + 1, :] for t in range(TB * Hp2)], axis=1)  # (1, TB*FEAT)

    out = pl.pallas_call(
        kernel,
        out_shape=jax.ShapeDtypeStruct((num_tiles, 1, TB * FEAT), jnp.float32),
        grid_spec=pltpu.PrefetchScalarGridSpec(
            num_scalar_prefetch=0,
            grid=(num_tiles,),
            in_specs=[
                pl.BlockSpec((TB, H, CW), lambda g: (g, 0, 0)),          # images (batch tile)
                pl.BlockSpec((K * CW, L1), lambda g: (0, 0)),            # conv1 Toeplitz (resident)
                pl.BlockSpec((3, L1), lambda g: (0, 0)),                 # conv1 bias/scale/shift
                pl.BlockSpec((K * L1, L2), lambda g: (0, 0)),            # conv2 Toeplitz + pool1 select
                pl.BlockSpec((3, L2), lambda g: (0, 0)),                 # conv2 bias/scale/shift
                pl.BlockSpec((L2, C2 * Wp2), lambda g: (0, 0)),          # pool2 lane-selection matrix
            ],
            out_specs=pl.BlockSpec((None, 1, TB * FEAT), lambda g: (g, 0, 0)),
        ),
        compiler_params=pltpu.CompilerParams(dimension_semantics=("parallel",)),
    )(x_l, B1, prm1, B2, prm2, S2)

    # Per-tile flat order is [image][h][c][w]; re-order to NCHW flatten (== x.view(N,-1)).
    feat = out.reshape(N_pad, Hp2, C2, Wp2)[:N]
    return jnp.transpose(feat, (0, 2, 1, 3)).reshape(N, -1)


# ---------------------------------------------------------------------------
# Pure-JAX reference (for the correctness check in __main__)
# ---------------------------------------------------------------------------
def _reference_forward(x, params):
    def conv(h, w, b):
        y = jax.lax.conv_general_dilated(
            h, w, window_strides=(1, 1), padding="VALID",
            dimension_numbers=("NCHW", "OIHW", "NCHW"),
            precision=jax.lax.Precision.HIGHEST)
        return y + b[None, :, None, None]

    def bn(h, g, bta, m, v):
        inv = jax.lax.rsqrt(v + BN_EPS)
        return (h - m[None, :, None, None]) * (g * inv)[None, :, None, None] \
            + bta[None, :, None, None]

    def pool(h):
        return jax.lax.reduce_window(h, -jnp.inf, jax.lax.max,
                                     (1, 1, 2, 2), (1, 1, 2, 2), "VALID")

    h = pool(bn(jax.nn.relu(conv(x, params["conv1_w"], params["conv1_b"])),
                params["bn1_gamma"], params["bn1_beta"],
                params["bn1_mean"], params["bn1_var"]))
    h = pool(bn(jax.nn.relu(conv(h, params["conv2_w"], params["conv2_b"])),
                params["bn2_gamma"], params["bn2_beta"],
                params["bn2_mean"], params["bn2_var"]))
    return h.reshape(h.shape[0], -1)


# ---------------------------------------------------------------------------
# Deterministic parameter init (PyTorch-like bounds, eval-mode BN stats)
# ---------------------------------------------------------------------------
def init_params(key, in_channels=3):
    ks = list(jax.random.split(key, 12))

    def conv_w(k, cout, cin, ksz):
        bound = 1.0 / (cin * ksz * ksz) ** 0.5
        return jax.random.uniform(k, (cout, cin, ksz, ksz), jnp.float32, -bound, bound)

    def conv_b(k, cout, cin, ksz):
        bound = 1.0 / (cin * ksz * ksz) ** 0.5
        return jax.random.uniform(k, (cout,), jnp.float32, -bound, bound)

    return {
        "conv1_w": conv_w(ks[0], 6, in_channels, 5),
        "conv1_b": conv_b(ks[1], 6, in_channels, 5),
        "bn1_gamma": jax.random.uniform(ks[2], (6,), jnp.float32, 0.5, 1.5),
        "bn1_beta": jax.random.uniform(ks[3], (6,), jnp.float32, -0.1, 0.1),
        "bn1_mean": jax.random.uniform(ks[4], (6,), jnp.float32, -0.1, 0.1),
        "bn1_var": jax.random.uniform(ks[5], (6,), jnp.float32, 0.5, 1.5),
        "conv2_w": conv_w(ks[6], 16, 6, 5),
        "conv2_b": conv_b(ks[7], 16, 6, 5),
        "bn2_gamma": jax.random.uniform(ks[8], (16,), jnp.float32, 0.5, 1.5),
        "bn2_beta": jax.random.uniform(ks[9], (16,), jnp.float32, -0.1, 0.1),
        "bn2_mean": jax.random.uniform(ks[10], (16,), jnp.float32, -0.1, 0.1),
        "bn2_var": jax.random.uniform(ks[11], (16,), jnp.float32, 0.5, 1.5),
    }


if __name__ == "__main__":
    key = jax.random.PRNGKey(0)
    k_x, k_p = jax.random.split(key)

    # 16x16 input -> conv5 -> 12 -> pool -> 6 -> conv5 -> 2 -> pool -> 1 -> 16 features.
    # N=16 with TB=8 -> 2 grid steps (even, so both v7x TensorCores stay busy) and a
    # 128-lane output row per step.
    x = jax.random.normal(k_x, (16, 3, 16, 16), dtype=jnp.float32)   # NCHW like PyTorch
    params = init_params(k_p, in_channels=3)

    fwd = jax.jit(lenet_feature_extractor)
    out = jax.block_until_ready(fwd(x, params))

    assert out.shape == (16, 16), out.shape
    assert out.dtype == jnp.float32

    ref = jax.block_until_ready(jax.jit(_reference_forward)(x, params))
    max_err = float(jnp.max(jnp.abs(out - ref)))
    assert max_err < 1e-3, f"mismatch vs reference: {max_err}"

    print("KERNEL_OK")
</pallas_src>

<mosaic_0001>
module attributes {stable_mosaic.version = 11 : i64} {
  func.func @kernel(%arg0: i32, %arg1: memref<8x16x48xf32, #tpu.memory_space<vmem>>, %arg2: memref<240x72xf32, #tpu.memory_space<vmem>>, %arg3: memref<3x72xf32, #tpu.memory_space<vmem>>, %arg4: memref<360x32xf32, #tpu.memory_space<vmem>>, %arg5: memref<3x32xf32, #tpu.memory_space<vmem>>, %arg6: memref<32x16xf32, #tpu.memory_space<vmem>>, %arg7: memref<1x1x128xf32, #tpu.memory_space<vmem>>) attributes {dimension_semantics = [#tpu.dimension_semantics<parallel>], iteration_bounds = array<i64: 2>, scalar_prefetch = 0 : i64, scratch_operands = 0 : i64, tpu.core_type = #tpu.core_type<tc>, window_params = [{transform_indices = @transform_0, window_bounds = array<i64: 8, 16, 48>}, {pipeline_mode = #tpu.pipeline_mode<synchronous>, transform_indices = @transform_1, window_bounds = array<i64: 240, 72>}, {pipeline_mode = #tpu.pipeline_mode<synchronous>, transform_indices = @transform_2, window_bounds = array<i64: 3, 72>}, {pipeline_mode = #tpu.pipeline_mode<synchronous>, transform_indices = @transform_3, window_bounds = array<i64: 360, 32>}, {pipeline_mode = #tpu.pipeline_mode<synchronous>, transform_indices = @transform_4, window_bounds = array<i64: 3, 32>}, {pipeline_mode = #tpu.pipeline_mode<synchronous>, transform_indices = @transform_5, window_bounds = array<i64: 32, 16>}, {transform_indices = @transform_6, window_bounds = array<i64: 1, 1, 128>}]} {
    %c0 = arith.constant 0 : index
    %c0_0 = arith.constant 0 : index
    %c0_1 = arith.constant 0 : index
    %0 = vector.load %arg1[%c0, %c0_0, %c0_1] : memref<8x16x48xf32, #tpu.memory_space<vmem>>, vector<1x16x48xf32>
    %1 = vector.shape_cast %0 : vector<1x16x48xf32> to vector<16x48xf32>
    %2 = vector.extract_strided_slice %1 {offsets = [0, 0], sizes = [12, 48], strides = [1, 1]} : vector<16x48xf32> to vector<12x48xf32>
    %c0_2 = arith.constant 0 : index
    %c0_3 = arith.constant 0 : index
    %c0_4 = arith.constant 0 : index
    %3 = vector.load %arg1[%c0_2, %c0_3, %c0_4] : memref<8x16x48xf32, #tpu.memory_space<vmem>>, vector<1x16x48xf32>
    %4 = vector.shape_cast %3 : vector<1x16x48xf32> to vector<16x48xf32>
    %5 = vector.extract_strided_slice %4 {offsets = [1, 0], sizes = [12, 48], strides = [1, 1]} : vector<16x48xf32> to vector<12x48xf32>
    %c0_5 = arith.constant 0 : index
    %c0_6 = arith.constant 0 : index
    %c0_7 = arith.constant 0 : index
    %6 = vector.load %arg1[%c0_5, %c0_6, %c0_7] : memref<8x16x48xf32, #tpu.memory_space<vmem>>, vector<1x16x48xf32>
    %7 = vector.shape_cast %6 : vector<1x16x48xf32> to vector<16x48xf32>
    %8 = vector.extract_strided_slice %7 {offsets = [2, 0], sizes = [12, 48], strides = [1, 1]} : vector<16x48xf32> to vector<12x48xf32>
    %c0_8 = arith.constant 0 : index
    %c0_9 = arith.constant 0 : index
    %c0_10 = arith.constant 0 : index
    %9 = vector.load %arg1[%c0_8, %c0_9, %c0_10] : memref<8x16x48xf32, #tpu.memory_space<vmem>>, vector<1x16x48xf32>
    %10 = vector.shape_cast %9 : vector<1x16x48xf32> to vector<16x48xf32>
    %11 = vector.extract_strided_slice %10 {offsets = [3, 0], sizes = [12, 48], strides = [1, 1]} : vector<16x48xf32> to vector<12x48xf32>
    %c0_11 = arith.constant 0 : index
    %c0_12 = arith.constant 0 : index
    %c0_13 = arith.constant 0 : index
    %12 = vector.load %arg1[%c0_11, %c0_12, %c0_13] : memref<8x16x48xf32, #tpu.memory_space<vmem>>, vector<1x16x48xf32>
    %13 = vector.shape_cast %12 : vector<1x16x48xf32> to vector<16x48xf32>
    %14 = vector.extract_strided_slice %13 {offsets = [4, 0], sizes = [12, 48], strides = [1, 1]} : vector<16x48xf32> to vector<12x48xf32>
    %15 = tpu.concatenate %2, %5, %8, %11, %14 in 1 : vector<12x48xf32>, vector<12x48xf32>, vector<12x48xf32>, vector<12x48xf32>, vector<12x48xf32> -> vector<12x240xf32>
    %c1 = arith.constant 1 : index
    %c0_14 = arith.constant 0 : index
    %c0_15 = arith.constant 0 : index
    %16 = vector.load %arg1[%c1, %c0_14, %c0_15] : memref<8x16x48xf32, #tpu.memory_space<vmem>>, vector<1x16x48xf32>
    %17 = vector.shape_cast %16 : vector<1x16x48xf32> to vector<16x48xf32>
    %18 = vector.extract_strided_slice %17 {offsets = [0, 0], sizes = [12, 48], strides = [1, 1]} : vector<16x48xf32> to vector<12x48xf32>
    %c1_16 = arith.constant 1 : index
    %c0_17 = arith.constant 0 : index
    %c0_18 = arith.constant 0 : index
    %19 = vector.load %arg1[%c1_16, %c0_17, %c0_18] : memref<8x16x48xf32, #tpu.memory_space<vmem>>, vector<1x16x48xf32>
    %20 = vector.shape_cast %19 : vector<1x16x48xf32> to vector<16x48xf32>
    %21 = vector.extract_strided_slice %20 {offsets = [1, 0], sizes = [12, 48], strides = [1, 1]} : vector<16x48xf32> to vector<12x48xf32>
    %c1_19 = arith.constant 1 : index
    %c0_20 = arith.constant 0 : index
    %c0_21 = arith.constant 0 : index
    %22 = vector.load %arg1[%c1_19, %c0_20, %c0_21] : memref<8x16x48xf32, #tpu.memory_space<vmem>>, vector<1x16x48xf32>
    %23 = vector.shape_cast %22 : vector<1x16x48xf32> to vector<16x48xf32>
    %24 = vector.extract_strided_slice %23 {offsets = [2, 0], sizes = [12, 48], strides = [1, 1]} : vector<16x48xf32> to vector<12x48xf32>
    %c1_22 = arith.constant 1 : index
    %c0_23 = arith.constant 0 : index
    %c0_24 = arith.constant 0 : index
    %25 = vector.load %arg1[%c1_22, %c0_23, %c0_24] : memref<8x16x48xf32, #tpu.memory_space<vmem>>, vector<1x16x48xf32>
    %26 = vector.shape_cast %25 : vector<1x16x48xf32> to vector<16x48xf32>
    %27 = vector.extract_strided_slice %26 {offsets = [3, 0], sizes = [12, 48], strides = [1, 1]} : vector<16x48xf32> to vector<12x48xf32>
    %c1_25 = arith.constant 1 : index
    %c0_26 = arith.constant 0 : index
    %c0_27 = arith.constant 0 : index
    %28 = vector.load %arg1[%c1_25, %c0_26, %c0_27] : memref<8x16x48xf32, #tpu.memory_space<vmem>>, vector<1x16x48xf32>
    %29 = vector.shape_cast %28 : vector<1x16x48xf32> to vector<16x48xf32>
    %30 = vector.extract_strided_slice %29 {offsets = [4, 0], sizes = [12, 48], strides = [1, 1]} : vector<16x48xf32> to vector<12x48xf32>
    %31 = tpu.concatenate %18, %21, %24, %27, %30 in 1 : vector<12x48xf32>, vector<12x48xf32>, vector<12x48xf32>, vector<12x48xf32>, vector<12x48xf32> -> vector<12x240xf32>
    %c2 = arith.constant 2 : index
    %c0_28 = arith.constant 0 : index
    %c0_29 = arith.constant 0 : index
    %32 = vector.load %arg1[%c2, %c0_28, %c0_29] : memref<8x16x48xf32, #tpu.memory_space<vmem>>, vector<1x16x48xf32>
    %33 = vector.shape_cast %32 : vector<1x16x48xf32> to vector<16x48xf32>
    %34 = vector.extract_strided_slice %33 {offsets = [0, 0], sizes = [12, 48], strides = [1, 1]} : vector<16x48xf32> to vector<12x48xf32>
    %c2_30 = arith.constant 2 : index
    %c0_31 = arith.constant 0 : index
    %c0_32 = arith.constant 0 : index
    %35 = vector.load %arg1[%c2_30, %c0_31, %c0_32] : memref<8x16x48xf32, #tpu.memory_space<vmem>>, vector<1x16x48xf32>
    %36 = vector.shape_cast %35 : vector<1x16x48xf32> to vector<16x48xf32>
    %37 = vector.extract_strided_slice %36 {offsets = [1, 0], sizes = [12, 48], strides = [1, 1]} : vector<16x48xf32> to vector<12x48xf32>
    %c2_33 = arith.constant 2 : index
    %c0_34 = arith.constant 0 : index
    %c0_35 = arith.constant 0 : index
    %38 = vector.load %arg1[%c2_33, %c0_34, %c0_35] : memref<8x16x48xf32, #tpu.memory_space<vmem>>, vector<1x16x48xf32>
    %39 = vector.shape_cast %38 : vector<1x16x48xf32> to vector<16x48xf32>
    %40 = vector.extract_strided_slice %39 {offsets = [2, 0], sizes = [12, 48], strides = [1, 1]} : vector<16x48xf32> to vector<12x48xf32>
    %c2_36 = arith.constant 2 : index
    %c0_37 = arith.constant 0 : index
    %c0_38 = arith.constant 0 : index
    %41 = vector.load %arg1[%c2_36, %c0_37, %c0_38] : memref<8x16x48xf32, #tpu.memory_space<vmem>>, vector<1x16x48xf32>
    %42 = vector.shape_cast %41 : vector<1x16x48xf32> to vector<16x48xf32>
    %43 = vector.extract_strided_slice %42 {offsets = [3, 0], sizes = [12, 48], strides = [1, 1]} : vector<16x48xf32> to vector<12x48xf32>
    %c2_39 = arith.constant 2 : index
    %c0_40 = arith.constant 0 : index
    %c0_41 = arith.constant 0 : index
    %44 = vector.load %arg1[%c2_39, %c0_40, %c0_41] : memref<8x16x48xf32, #tpu.memory_space<vmem>>, vector<1x16x48xf32>
    %45 = vector.shape_cast %44 : vector<1x16x48xf32> to vector<16x48xf32>
    %46 = vector.extract_strided_slice %45 {offsets = [4, 0], sizes = [12, 48], strides = [1, 1]} : vector<16x48xf32> to vector<12x48xf32>
    %47 = tpu.concatenate %34, %37, %40, %43, %46 in 1 : vector<12x48xf32>, vector<12x48xf32>, vector<12x48xf32>, vector<12x48xf32>, vector<12x48xf32> -> vector<12x240xf32>
    %c3 = arith.constant 3 : index
    %c0_42 = arith.constant 0 : index
    %c0_43 = arith.constant 0 : index
    %48 = vector.load %arg1[%c3, %c0_42, %c0_43] : memref<8x16x48xf32, #tpu.memory_space<vmem>>, vector<1x16x48xf32>
    %49 = vector.shape_cast %48 : vector<1x16x48xf32> to vector<16x48xf32>
    %50 = vector.extract_strided_slice %49 {offsets = [0, 0], sizes = [12, 48], strides = [1, 1]} : vector<16x48xf32> to vector<12x48xf32>
    %c3_44 = arith.constant 3 : index
    %c0_45 = arith.constant 0 : index
    %c0_46 = arith.constant 0 : index
    %51 = vector.load %arg1[%c3_44, %c0_45, %c0_46] : memref<8x16x48xf32, #tpu.memory_space<vmem>>, vector<1x16x48xf32>
    %52 = vector.shape_cast %51 : vector<1x16x48xf32> to vector<16x48xf32>
    %53 = vector.extract_strided_slice %52 {offsets = [1, 0], sizes = [12, 48], strides = [1, 1]} : vector<16x48xf32> to vector<12x48xf32>
    %c3_47 = arith.constant 3 : index
    %c0_48 = arith.constant 0 : index
    %c0_49 = arith.constant 0 : index
    %54 = vector.load %arg1[%c3_47, %c0_48, %c0_49] : memref<8x16x48xf32, #tpu.memory_space<vmem>>, vector<1x16x48xf32>
    %55 = vector.shape_cast %54 : vector<1x16x48xf32> to vector<16x48xf32>
    %56 = vector.extract_strided_slice %55 {offsets = [2, 0], sizes = [12, 48], strides = [1, 1]} : vector<16x48xf32> to vector<12x48xf32>
    %c3_50 = arith.constant 3 : index
    %c0_51 = arith.constant 0 : index
    %c0_52 = arith.constant 0 : index
    %57 = vector.load %arg1[%c3_50, %c0_51, %c0_52] : memref<8x16x48xf32, #tpu.memory_space<vmem>>, vector<1x16x48xf32>
    %58 = vector.shape_cast %57 : vector<1x16x48xf32> to vector<16x48xf32>
    %59 = vector.extract_strided_slice %58 {offsets = [3, 0], sizes = [12, 48], strides = [1, 1]} : vector<16x48xf32> to vector<12x48xf32>
    %c3_53 = arith.constant 3 : index
    %c0_54 = arith.constant 0 : index
    %c0_55 = arith.constant 0 : index
    %60 = vector.load %arg1[%c3_53, %c0_54, %c0_55] : memref<8x16x48xf32, #tpu.memory_space<vmem>>, vector<1x16x48xf32>
    %61 = vector.shape_cast %60 : vector<1x16x48xf32> to vector<16x48xf32>
    %62 = vector.extract_strided_slice %61 {offsets = [4, 0], sizes = [12, 48], strides = [1, 1]} : vector<16x48xf32> to vector<12x48xf32>
    %63 = tpu.concatenate %50, %53, %56, %59, %62 in 1 : vector<12x48xf32>, vector<12x48xf32>, vector<12x48xf32>, vector<12x48xf32>, vector<12x48xf32> -> vector<12x240xf32>
    %c4 = arith.constant 4 : index
    %c0_56 = arith.constant 0 : index
    %c0_57 = arith.constant 0 : index
    %64 = vector.load %arg1[%c4, %c0_56, %c0_57] : memref<8x16x48xf32, #tpu.memory_space<vmem>>, vector<1x16x48xf32>
    %65 = vector.shape_cast %64 : vector<1x16x48xf32> to vector<16x48xf32>
    %66 = vector.extract_strided_slice %65 {offsets = [0, 0], sizes = [12, 48], strides = [1, 1]} : vector<16x48xf32> to vector<12x48xf32>
    %c4_58 = arith.constant 4 : index
    %c0_59 = arith.constant 0 : index
    %c0_60 = arith.constant 0 : index
    %67 = vector.load %arg1[%c4_58, %c0_59, %c0_60] : memref<8x16x48xf32, #tpu.memory_space<vmem>>, vector<1x16x48xf32>
    %68 = vector.shape_cast %67 : vector<1x16x48xf32> to vector<16x48xf32>
    %69 = vector.extract_strided_slice %68 {offsets = [1, 0], sizes = [12, 48], strides = [1, 1]} : vector<16x48xf32> to vector<12x48xf32>
    %c4_61 = arith.constant 4 : index
    %c0_62 = arith.constant 0 : index
    %c0_63 = arith.constant 0 : index
    %70 = vector.load %arg1[%c4_61, %c0_62, %c0_63] : memref<8x16x48xf32, #tpu.memory_space<vmem>>, vector<1x16x48xf32>
    %71 = vector.shape_cast %70 : vector<1x16x48xf32> to vector<16x48xf32>
    %72 = vector.extract_strided_slice %71 {offsets = [2, 0], sizes = [12, 48], strides = [1, 1]} : vector<16x48xf32> to vector<12x48xf32>
    %c4_64 = arith.constant 4 : index
    %c0_65 = arith.constant 0 : index
    %c0_66 = arith.constant 0 : index
    %73 = vector.load %arg1[%c4_64, %c0_65, %c0_66] : memref<8x16x48xf32, #tpu.memory_space<vmem>>, vector<1x16x48xf32>
    %74 = vector.shape_cast %73 : vector<1x16x48xf32> to vector<16x48xf32>
    %75 = vector.extract_strided_slice %74 {offsets = [3, 0], sizes = [12, 48], strides = [1, 1]} : vector<16x48xf32> to vector<12x48xf32>
    %c4_67 = arith.constant 4 : index
    %c0_68 = arith.constant 0 : index
    %c0_69 = arith.constant 0 : index
    %76 = vector.load %arg1[%c4_67, %c0_68, %c0_69] : memref<8x16x48xf32, #tpu.memory_space<vmem>>, vector<1x16x48xf32>
    %77 = vector.shape_cast %76 : vector<1x16x48xf32> to vector<16x48xf32>
    %78 = vector.extract_strided_slice %77 {offsets = [4, 0], sizes = [12, 48], strides = [1, 1]} : vector<16x48xf32> to vector<12x48xf32>
    %79 = tpu.concatenate %66, %69, %72, %75, %78 in 1 : vector<12x48xf32>, vector<12x48xf32>, vector<12x48xf32>, vector<12x48xf32>, vector<12x48xf32> -> vector<12x240xf32>
    %c5 = arith.constant 5 : index
    %c0_70 = arith.constant 0 : index
    %c0_71 = arith.constant 0 : index
    %80 = vector.load %arg1[%c5, %c0_70, %c0_71] : memref<8x16x48xf32, #tpu.memory_space<vmem>>, vector<1x16x48xf32>
    %81 = vector.shape_cast %80 : vector<1x16x48xf32> to vector<16x48xf32>
    %82 = vector.extract_strided_slice %81 {offsets = [0, 0], sizes = [12, 48], strides = [1, 1]} : vector<16x48xf32> to vector<12x48xf32>
    %c5_72 = arith.constant 5 : index
    %c0_73 = arith.constant 0 : index
    %c0_74 = arith.constant 0 : index
    %83 = vector.load %arg1[%c5_72, %c0_73, %c0_74] : memref<8x16x48xf32, #tpu.memory_space<vmem>>, vector<1x16x48xf32>
    %84 = vector.shape_cast %83 : vector<1x16x48xf32> to vector<16x48xf32>
    %85 = vector.extract_strided_slice %84 {offsets = [1, 0], sizes = [12, 48], strides = [1, 1]} : vector<16x48xf32> to vector<12x48xf32>
    %c5_75 = arith.constant 5 : index
    %c0_76 = arith.constant 0 : index
    %c0_77 = arith.constant 0 : index
    %86 = vector.load %arg1[%c5_75, %c0_76, %c0_77] : memref<8x16x48xf32, #tpu.memory_space<vmem>>, vector<1x16x48xf32>
    %87 = vector.shape_cast %86 : vector<1x16x48xf32> to vector<16x48xf32>
    %88 = vector.extract_strided_slice %87 {offsets = [2, 0], sizes = [12, 48], strides = [1, 1]} : vector<16x48xf32> to vector<12x48xf32>
    %c5_78 = arith.constant 5 : index
    %c0_79 = arith.constant 0 : index
    %c0_80 = arith.constant 0 : index
    %89 = vector.load %arg1[%c5_78, %c0_79, %c0_80] : memref<8x16x48xf32, #tpu.memory_space<vmem>>, vector<1x16x48xf32>
    %90 = vector.shape_cast %89 : vector<1x16x48xf32> to vector<16x48xf32>
    %91 = vector.extract_strided_slice %90 {offsets = [3, 0], sizes = [12, 48], strides = [1, 1]} : vector<16x48xf32> to vector<12x48xf32>
    %c5_81 = arith.constant 5 : index
    %c0_82 = arith.constant 0 : index
    %c0_83 = arith.constant 0 : index
    %92 = vector.load %arg1[%c5_81, %c0_82, %c0_83] : memref<8x16x48xf32, #tpu.memory_space<vmem>>, vector<1x16x48xf32>
    %93 = vector.shape_cast %92 : vector<1x16x48xf32> to vector<16x48xf32>
    %94 = vector.extract_strided_slice %93 {offsets = [4, 0], sizes = [12, 48], strides = [1, 1]} : vector<16x48xf32> to vector<12x48xf32>
    %95 = tpu.concatenate %82, %85, %88, %91, %94 in 1 : vector<12x48xf32>, vector<12x48xf32>, vector<12x48xf32>, vector<12x48xf32>, vector<12x48xf32> -> vector<12x240xf32>
    %c6 = arith.constant 6 : index
    %c0_84 = arith.constant 0 : index
    %c0_85 = arith.constant 0 : index
    %96 = vector.load %arg1[%c6, %c0_84, %c0_85] : memref<8x16x48xf32, #tpu.memory_space<vmem>>, vector<1x16x48xf32>
    %97 = vector.shape_cast %96 : vector<1x16x48xf32> to vector<16x48xf32>
    %98 = vector.extract_strided_slice %97 {offsets = [0, 0], sizes = [12, 48], strides = [1, 1]} : vector<16x48xf32> to vector<12x48xf32>
    %c6_86 = arith.constant 6 : index
    %c0_87 = arith.constant 0 : index
    %c0_88 = arith.constant 0 : index
    %99 = vector.load %arg1[%c6_86, %c0_87, %c0_88] : memref<8x16x48xf32, #tpu.memory_space<vmem>>, vector<1x16x48xf32>
    %100 = vector.shape_cast %99 : vector<1x16x48xf32> to vector<16x48xf32>
    %101 = vector.extract_strided_slice %100 {offsets = [1, 0], sizes = [12, 48], strides = [1, 1]} : vector<16x48xf32> to vector<12x48xf32>
    %c6_89 = arith.constant 6 : index
    %c0_90 = arith.constant 0 : index
    %c0_91 = arith.constant 0 : index
    %102 = vector.load %arg1[%c6_89, %c0_90, %c0_91] : memref<8x16x48xf32, #tpu.memory_space<vmem>>, vector<1x16x48xf32>
    %103 = vector.shape_cast %102 : vector<1x16x48xf32> to vector<16x48xf32>
    %104 = vector.extract_strided_slice %103 {offsets = [2, 0], sizes = [12, 48], strides = [1, 1]} : vector<16x48xf32> to vector<12x48xf32>
    %c6_92 = arith.constant 6 : index
    %c0_93 = arith.constant 0 : index
    %c0_94 = arith.constant 0 : index
    %105 = vector.load %arg1[%c6_92, %c0_93, %c0_94] : memref<8x16x48xf32, #tpu.memory_space<vmem>>, vector<1x16x48xf32>
    %106 = vector.shape_cast %105 : vector<1x16x48xf32> to vector<16x48xf32>
    %107 = vector.extract_strided_slice %106 {offsets = [3, 0], sizes = [12, 48], strides = [1, 1]} : vector<16x48xf32> to vector<12x48xf32>
    %c6_95 = arith.constant 6 : index
    %c0_96 = arith.constant 0 : index
    %c0_97 = arith.constant 0 : index
    %108 = vector.load %arg1[%c6_95, %c0_96, %c0_97] : memref<8x16x48xf32, #tpu.memory_space<vmem>>, vector<1x16x48xf32>
    %109 = vector.shape_cast %108 : vector<1x16x48xf32> to vector<16x48xf32>
    %110 = vector.extract_strided_slice %109 {offsets = [4, 0], sizes = [12, 48], strides = [1, 1]} : vector<16x48xf32> to vector<12x48xf32>
    %111 = tpu.concatenate %98, %101, %104, %107, %110 in 1 : vector<12x48xf32>, vector<12x48xf32>, vector<12x48xf32>, vector<12x48xf32>, vector<12x48xf32> -> vector<12x240xf32>
    %c7 = arith.constant 7 : index
    %c0_98 = arith.constant 0 : index
    %c0_99 = arith.constant 0 : index
    %112 = vector.load %arg1[%c7, %c0_98, %c0_99] : memref<8x16x48xf32, #tpu.memory_space<vmem>>, vector<1x16x48xf32>
    %113 = vector.shape_cast %112 : vector<1x16x48xf32> to vector<16x48xf32>
    %114 = vector.extract_strided_slice %113 {offsets = [0, 0], sizes = [12, 48], strides = [1, 1]} : vector<16x48xf32> to vector<12x48xf32>
    %c7_100 = arith.constant 7 : index
    %c0_101 = arith.constant 0 : index
    %c0_102 = arith.constant 0 : index
    %115 = vector.load %arg1[%c7_100, %c0_101, %c0_102] : memref<8x16x48xf32, #tpu.memory_space<vmem>>, vector<1x16x48xf32>
    %116 = vector.shape_cast %115 : vector<1x16x48xf32> to vector<16x48xf32>
    %117 = vector.extract_strided_slice %116 {offsets = [1, 0], sizes = [12, 48], strides = [1, 1]} : vector<16x48xf32> to vector<12x48xf32>
    %c7_103 = arith.constant 7 : index
    %c0_104 = arith.constant 0 : index
    %c0_105 = arith.constant 0 : index
    %118 = vector.load %arg1[%c7_103, %c0_104, %c0_105] : memref<8x16x48xf32, #tpu.memory_space<vmem>>, vector<1x16x48xf32>
    %119 = vector.shape_cast %118 : vector<1x16x48xf32> to vector<16x48xf32>
    %120 = vector.extract_strided_slice %119 {offsets = [2, 0], sizes = [12, 48], strides = [1, 1]} : vector<16x48xf32> to vector<12x48xf32>
    %c7_106 = arith.constant 7 : index
    %c0_107 = arith.constant 0 : index
    %c0_108 = arith.constant 0 : index
    %121 = vector.load %arg1[%c7_106, %c0_107, %c0_108] : memref<8x16x48xf32, #tpu.memory_space<vmem>>, vector<1x16x48xf32>
    %122 = vector.shape_cast %121 : vector<1x16x48xf32> to vector<16x48xf32>
    %123 = vector.extract_strided_slice %122 {offsets = [3, 0], sizes = [12, 48], strides = [1, 1]} : vector<16x48xf32> to vector<12x48xf32>
    %c7_109 = arith.constant 7 : index
    %c0_110 = arith.constant 0 : index
    %c0_111 = arith.constant 0 : index
    %124 = vector.load %arg1[%c7_109, %c0_110, %c0_111] : memref<8x16x48xf32, #tpu.memory_space<vmem>>, vector<1x16x48xf32>
    %125 = vector.shape_cast %124 : vector<1x16x48xf32> to vector<16x48xf32>
    %126 = vector.extract_strided_slice %125 {offsets = [4, 0], sizes = [12, 48], strides = [1, 1]} : vector<16x48xf32> to vector<12x48xf32>
    %127 = tpu.concatenate %114, %117, %120, %123, %126 in 1 : vector<12x48xf32>, vector<12x48xf32>, vector<12x48xf32>, vector<12x48xf32>, vector<12x48xf32> -> vector<12x240xf32>
    %128 = tpu.concatenate %15, %31, %47, %63, %79, %95, %111, %127 in 0 : vector<12x240xf32>, vector<12x240xf32>, vector<12x240xf32>, vector<12x240xf32>, vector<12x240xf32>, vector<12x240xf32>, vector<12x240xf32>, vector<12x240xf32> -> vector<96x240xf32>
    %c0_112 = arith.constant 0 : index
    %c0_113 = arith.constant 0 : index
    %129 = vector.load %arg2[%c0_112, %c0_113] : memref<240x72xf32, #tpu.memory_space<vmem>>, vector<240x72xf32>
    %cst = arith.constant dense<0.000000e+00> : vector<96x72xf32>
    %130 = tpu.matmul %128, %129, %cst {dimension_numbers = #tpu.dot_dimension_numbers<[1], [0], [0], [1], [0, 0, 1, 1], [], []>} : vector<96x240xf32>, vector<240x72xf32>, vector<96x72xf32> -> vector<96x72xf32>
    %c0_114 = arith.constant 0 : index
    %c0_115 = arith.constant 0 : index
    %131 = vector.load %arg3[%c0_114, %c0_115] : memref<3x72xf32, #tpu.memory_space<vmem>>, vector<1x72xf32>
    %132 = vector.broadcast %131 : vector<1x72xf32> to vector<96x72xf32>
    %133 = arith.addf %130, %132 : vector<96x72xf32>
    %cst_116 = arith.constant 0.000000e+00 : f32
    %134 = vector.broadcast %cst_116 : f32 to vector<96x72xf32>
    %135 = arith.maximumf %133, %134 : vector<96x72xf32>
    %c1_117 = arith.constant 1 : index
    %c0_118 = arith.constant 0 : index
    %136 = vector.load %arg3[%c1_117, %c0_118] : memref<3x72xf32, #tpu.memory_space<vmem>>, vector<1x72xf32>
    %137 = vector.broadcast %136 : vector<1x72xf32> to vector<96x72xf32>
    %138 = arith.mulf %135, %137 : vector<96x72xf32>
    %c2_119 = arith.constant 2 : index
    %c0_120 = arith.constant 0 : index
    %139 = vector.load %arg3[%c2_119, %c0_120] : memref<3x72xf32, #tpu.memory_space<vmem>>, vector<1x72xf32>
    %140 = vector.broadcast %139 : vector<1x72xf32> to vector<96x72xf32>
    %141 = arith.addf %138, %140 : vector<96x72xf32>
    %142 = vector.extract_strided_slice %141 {offsets = [0, 1], sizes = [96, 71], strides = [1, 1]} : vector<96x72xf32> to vector<96x71xf32>
    %143 = vector.extract_strided_slice %141 {offsets = [0, 0], sizes = [96, 1], strides = [1, 1]} : vector<96x72xf32> to vector<96x1xf32>
    %144 = tpu.concatenate %142, %143 in 1 : vector<96x71xf32>, vector<96x1xf32> -> vector<96x72xf32>
    %145 = arith.maximumf %141, %144 : vector<96x72xf32>
    %146 = vector.extract_strided_slice %145 {offsets = [0, 0], sizes = [95, 72], strides = [1, 1]} : vector<96x72xf32> to vector<95x72xf32>
    %147 = vector.extract_strided_slice %145 {offsets = [1, 0], sizes = [95, 72], strides = [1, 1]} : vector<96x72xf32> to vector<95x72xf32>
    %148 = arith.maximumf %146, %147 : vector<95x72xf32>
    %149 = vector.extract_strided_slice %148 {offsets = [0, 0], sizes = [1, 72], strides = [1, 1]} : vector<95x72xf32> to vector<1x72xf32>
    %150 = vector.extract_strided_slice %148 {offsets = [2, 0], sizes = [1, 72], strides = [1, 1]} : vector<95x72xf32> to vector<1x72xf32>
    %151 = vector.extract_strided_slice %148 {offsets = [4, 0], sizes = [1, 72], strides = [1, 1]} : vector<95x72xf32> to vector<1x72xf32>
    %152 = vector.extract_strided_slice %148 {offsets = [6, 0], sizes = [1, 72], strides = [1, 1]} : vector<95x72xf32> to vector<1x72xf32>
    %153 = vector.extract_strided_slice %148 {offsets = [8, 0], sizes = [1, 72], strides = [1, 1]} : vector<95x72xf32> to vector<1x72xf32>
    %154 = tpu.concatenate %149, %150, %151, %152, %153 in 1 : vector<1x72xf32>, vector<1x72xf32>, vector<1x72xf32>, vector<1x72xf32>, vector<1x72xf32> -> vector<1x360xf32>
    %155 = vector.extract_strided_slice %148 {offsets = [2, 0], sizes = [1, 72], strides = [1, 1]} : vector<95x72xf32> to vector<1x72xf32>
    %156 = vector.extract_strided_slice %148 {offsets = [4, 0], sizes = [1, 72], strides = [1, 1]} : vector<95x72xf32> to vector<1x72xf32>
    %157 = vector.extract_strided_slice %148 {offsets = [6, 0], sizes = [1, 72], strides = [1, 1]} : vector<95x72xf32> to vector<1x72xf32>
    %158 = vector.extract_strided_slice %148 {offsets = [8, 0], sizes = [1, 72], strides = [1, 1]} : vector<95x72xf32> to vector<1x72xf32>
    %159 = vector.extract_strided_slice %148 {offsets = [10, 0], sizes = [1, 72], strides = [1, 1]} : vector<95x72xf32> to vector<1x72xf32>
    %160 = tpu.concatenate %155, %156, %157, %158, %159 in 1 : vector<1x72xf32>, vector<1x72xf32>, vector<1x72xf32>, vector<1x72xf32>, vector<1x72xf32> -> vector<1x360xf32>
    %161 = vector.extract_strided_slice %148 {offsets = [12, 0], sizes = [1, 72], strides = [1, 1]} : vector<95x72xf32> to vector<1x72xf32>
    %162 = vector.extract_strided_slice %148 {offsets = [14, 0], sizes = [1, 72], strides = [1, 1]} : vector<95x72xf32> to vector<1x72xf32>
    %163 = vector.extract_strided_slice %148 {offsets = [16, 0], sizes = [1, 72], strides = [1, 1]} : vector<95x72xf32> to vector<1x72xf32>
    %164 = vector.extract_strided_slice %148 {offsets = [18, 0], sizes = [1, 72], strides = [1, 1]} : vector<95x72xf32> to vector<1x72xf32>
    %165 = vector.extract_strided_slice %148 {offsets = [20, 0], sizes = [1, 72], strides = [1, 1]} : vector<95x72xf32> to vector<1x72xf32>
    %166 = tpu.concatenate %161, %162, %163, %164, %165 in 1 : vector<1x72xf32>, vector<1x72xf32>, vector<1x72xf32>, vector<1x72xf32>, vector<1x72xf32> -> vector<1x360xf32>
    %167 = vector.extract_strided_slice %148 {offsets = [14, 0], sizes = [1, 72], strides = [1, 1]} : vector<95x72xf32> to vector<1x72xf32>
    %168 = vector.extract_strided_slice %148 {offsets = [16, 0], sizes = [1, 72], strides = [1, 1]} : vector<95x72xf32> to vector<1x72xf32>
    %169 = vector.extract_strided_slice %148 {offsets = [18, 0], sizes = [1, 72], strides = [1, 1]} : vector<95x72xf32> to vector<1x72xf32>
    %170 = vector.extract_strided_slice %148 {offsets = [20, 0], sizes = [1, 72], strides = [1, 1]} : vector<95x72xf32> to vector<1x72xf32>
    %171 = vector.extract_strided_slice %148 {offsets = [22, 0], sizes = [1, 72], strides = [1, 1]} : vector<95x72xf32> to vector<1x72xf32>
    %172 = tpu.concatenate %167, %168, %169, %170, %171 in 1 : vector<1x72xf32>, vector<1x72xf32>, vector<1x72xf32>, vector<1x72xf32>, vector<1x72xf32> -> vector<1x360xf32>
    %173 = vector.extract_strided_slice %148 {offsets = [24, 0], sizes = [1, 72], strides = [1, 1]} : vector<95x72xf32> to vector<1x72xf32>
    %174 = vector.extract_strided_slice %148 {offsets = [26, 0], sizes = [1, 72], strides = [1, 1]} : vector<95x72xf32> to vector<1x72xf32>
    %175 = vector.extract_strided_slice %148 {offsets = [28, 0], sizes = [1, 72], strides = [1, 1]} : vector<95x72xf32> to vector<1x72xf32>
    %176 = vector.extract_strided_slice %148 {offsets = [30, 0], sizes = [1, 72], strides = [1, 1]} : vector<95x72xf32> to vector<1x72xf32>
    %177 = vector.extract_strided_slice %148 {offsets = [32, 0], sizes = [1, 72], strides = [1, 1]} : vector<95x72xf32> to vector<1x72xf32>
    %178 = tpu.concatenate %173, %174, %175, %176, %177 in 1 : vector<1x72xf32>, vector<1x72xf32>, vector<1x72xf32>, vector<1x72xf32>, vector<1x72xf32> -> vector<1x360xf32>
    %179 = vector.extract_strided_slice %148 {offsets = [26, 0], sizes = [1, 72], strides = [1, 1]} : vector<95x72xf32> to vector<1x72xf32>
    %180 = vector.extract_strided_slice %148 {offsets = [28, 0], sizes = [1, 72], strides = [1, 1]} : vector<95x72xf32> to vector<1x72xf32>
    %181 = vector.extract_strided_slice %148 {offsets = [30, 0], sizes = [1, 72], strides = [1, 1]} : vector<95x72xf32> to vector<1x72xf32>
    %182 = vector.extract_strided_slice %148 {offsets = [32, 0], sizes = [1, 72], strides = [1, 1]} : vector<95x72xf32> to vector<1x72xf32>
    %183 = vector.extract_strided_slice %148 {offsets = [34, 0], sizes = [1, 72], strides = [1, 1]} : vector<95x72xf32> to vector<1x72xf32>
    %184 = tpu.concatenate %179, %180, %181, %182, %183 in 1 : vector<1x72xf32>, vector<1x72xf32>, vector<1x72xf32>, vector<1x72xf32>, vector<1x72xf32> -> vector<1x360xf32>
    %185 = vector.extract_strided_slice %148 {offsets = [36, 0], sizes = [1, 72], strides = [1, 1]} : vector<95x72xf32> to vector<1x72xf32>
    %186 = vector.extract_strided_slice %148 {offsets = [38, 0], sizes = [1, 72], strides = [1, 1]} : vector<95x72xf32> to vector<1x72xf32>
    %187 = vector.extract_strided_slice %148 {offsets = [40, 0], sizes = [1, 72], strides = [1, 1]} : vector<95x72xf32> to vector<1x72xf32>
    %188 = vector.extract_strided_slice %148 {offsets = [42, 0], sizes = [1, 72], strides = [1, 1]} : vector<95x72xf32> to vector<1x72xf32>
    %189 = vector.extract_strided_slice %148 {offsets = [44, 0], sizes = [1, 72], strides = [1, 1]} : vector<95x72xf32> to vector<1x72xf32>
    %190 = tpu.concatenate %185, %186, %187, %188, %189 in 1 : vector<1x72xf32>, vector<1x72xf32>, vector<1x72xf32>, vector<1x72xf32>, vector<1x72xf32> -> vector<1x360xf32>
    %191 = vector.extract_strided_slice %148 {offsets = [38, 0], sizes = [1, 72], strides = [1, 1]} : vector<95x72xf32> to vector<1x72xf32>
    %192 = vector.extract_strided_slice %148 {offsets = [40, 0], sizes = [1, 72], strides = [1, 1]} : vector<95x72xf32> to vector<1x72xf32>
    %193 = vector.extract_strided_slice %148 {offsets = [42, 0], sizes = [1, 72], strides = [1, 1]} : vector<95x72xf32> to vector<1x72xf32>
    %194 = vector.extract_strided_slice %148 {offsets = [44, 0], sizes = [1, 72], strides = [1, 1]} : vector<95x72xf32> to vector<1x72xf32>
    %195 = vector.extract_strided_slice %148 {offsets = [46, 0], sizes = [1, 72], strides = [1, 1]} : vector<95x72xf32> to vector<1x72xf32>
    %196 = tpu.concatenate %191, %192, %193, %194, %195 in 1 : vector<1x72xf32>, vector<1x72xf32>, vector<1x72xf32>, vector<1x72xf32>, vector<1x72xf32> -> vector<1x360xf32>
    %197 = vector.extract_strided_slice %148 {offsets = [48, 0], sizes = [1, 72], strides = [1, 1]} : vector<95x72xf32> to vector<1x72xf32>
    %198 = vector.extract_strided_slice %148 {offsets = [50, 0], sizes = [1, 72], strides = [1, 1]} : vector<95x72xf32> to vector<1x72xf32>
    %199 = vector.extract_strided_slice %148 {offsets = [52, 0], sizes = [1, 72], strides = [1, 1]} : vector<95x72xf32> to vector<1x72xf32>
    %200 = vector.extract_strided_slice %148 {offsets = [54, 0], sizes = [1, 72], strides = [1, 1]} : vector<95x72xf32> to vector<1x72xf32>
    %201 = vector.extract_strided_slice %148 {offsets = [56, 0], sizes = [1, 72], strides = [1, 1]} : vector<95x72xf32> to vector<1x72xf32>
    %202 = tpu.concatenate %197, %198, %199, %200, %201 in 1 : vector<1x72xf32>, vector<1x72xf32>, vector<1x72xf32>, vector<1x72xf32>, vector<1x72xf32> -> vector<1x360xf32>
    %203 = vector.extract_strided_slice %148 {offsets = [50, 0], sizes = [1, 72], strides = [1, 1]} : vector<95x72xf32> to vector<1x72xf32>
    %204 = vector.extract_strided_slice %148 {offsets = [52, 0], sizes = [1, 72], strides = [1, 1]} : vector<95x72xf32> to vector<1x72xf32>
    %205 = vector.extract_strided_slice %148 {offsets = [54, 0], sizes = [1, 72], strides = [1, 1]} : vector<95x72xf32> to vector<1x72xf32>
    %206 = vector.extract_strided_slice %148 {offsets = [56, 0], sizes = [1, 72], strides = [1, 1]} : vector<95x72xf32> to vector<1x72xf32>
    %207 = vector.extract_strided_slice %148 {offsets = [58, 0], sizes = [1, 72], strides = [1, 1]} : vector<95x72xf32> to vector<1x72xf32>
    %208 = tpu.concatenate %203, %204, %205, %206, %207 in 1 : vector<1x72xf32>, vector<1x72xf32>, vector<1x72xf32>, vector<1x72xf32>, vector<1x72xf32> -> vector<1x360xf32>
    %209 = vector.extract_strided_slice %148 {offsets = [60, 0], sizes = [1, 72], strides = [1, 1]} : vector<95x72xf32> to vector<1x72xf32>
    %210 = vector.extract_strided_slice %148 {offsets = [62, 0], sizes = [1, 72], strides = [1, 1]} : vector<95x72xf32> to vector<1x72xf32>
    %211 = vector.extract_strided_slice %148 {offsets = [64, 0], sizes = [1, 72], strides = [1, 1]} : vector<95x72xf32> to vector<1x72xf32>
    %212 = vector.extract_strided_slice %148 {offsets = [66, 0], sizes = [1, 72], strides = [1, 1]} : vector<95x72xf32> to vector<1x72xf32>
    %213 = vector.extract_strided_slice %148 {offsets = [68, 0], sizes = [1, 72], strides = [1, 1]} : vector<95x72xf32> to vector<1x72xf32>
    %214 = tpu.concatenate %209, %210, %211, %212, %213 in 1 : vector<1x72xf32>, vector<1x72xf32>, vector<1x72xf32>, vector<1x72xf32>, vector<1x72xf32> -> vector<1x360xf32>
    %215 = vector.extract_strided_slice %148 {offsets = [62, 0], sizes = [1, 72], strides = [1, 1]} : vector<95x72xf32> to vector<1x72xf32>
    %216 = vector.extract_strided_slice %148 {offsets = [64, 0], sizes = [1, 72], strides = [1, 1]} : vector<95x72xf32> to vector<1x72xf32>
    %217 = vector.extract_strided_slice %148 {offsets = [66, 0], sizes = [1, 72], strides = [1, 1]} : vector<95x72xf32> to vector<1x72xf32>
    %218 = vector.extract_strided_slice %148 {offsets = [68, 0], sizes = [1, 72], strides = [1, 1]} : vector<95x72xf32> to vector<1x72xf32>
    %219 = vector.extract_strided_slice %148 {offsets = [70, 0], sizes = [1, 72], strides = [1, 1]} : vector<95x72xf32> to vector<1x72xf32>
    %220 = tpu.concatenate %215, %216, %217, %218, %219 in 1 : vector<1x72xf32>, vector<1x72xf32>, vector<1x72xf32>, vector<1x72xf32>, vector<1x72xf32> -> vector<1x360xf32>
    %221 = vector.extract_strided_slice %148 {offsets = [72, 0], sizes = [1, 72], strides = [1, 1]} : vector<95x72xf32> to vector<1x72xf32>
    %222 = vector.extract_strided_slice %148 {offsets = [74, 0], sizes = [1, 72], strides = [1, 1]} : vector<95x72xf32> to vector<1x72xf32>
    %223 = vector.extract_strided_slice %148 {offsets = [76, 0], sizes = [1, 72], strides = [1, 1]} : vector<95x72xf32> to vector<1x72xf32>
    %224 = vector.extract_strided_slice %148 {offsets = [78, 0], sizes = [1, 72], strides = [1, 1]} : vector<95x72xf32> to vector<1x72xf32>
    %225 = vector.extract_strided_slice %148 {offsets = [80, 0], sizes = [1, 72], strides = [1, 1]} : vector<95x72xf32> to vector<1x72xf32>
    %226 = tpu.concatenate %221, %222, %223, %224, %225 in 1 : vector<1x72xf32>, vector<1x72xf32>, vector<1x72xf32>, vector<1x72xf32>, vector<1x72xf32> -> vector<1x360xf32>
    %227 = vector.extract_strided_slice %148 {offsets = [74, 0], sizes = [1, 72], strides = [1, 1]} : vector<95x72xf32> to vector<1x72xf32>
    %228 = vector.extract_strided_slice %148 {offsets = [76, 0], sizes = [1, 72], strides = [1, 1]} : vector<95x72xf32> to vector<1x72xf32>
    %229 = vector.extract_strided_slice %148 {offsets = [78, 0], sizes = [1, 72], strides = [1, 1]} : vector<95x72xf32> to vector<1x72xf32>
    %230 = vector.extract_strided_slice %148 {offsets = [80, 0], sizes = [1, 72], strides = [1, 1]} : vector<95x72xf32> to vector<1x72xf32>
    %231 = vector.extract_strided_slice %148 {offsets = [82, 0], sizes = [1, 72], strides = [1, 1]} : vector<95x72xf32> to vector<1x72xf32>
    %232 = tpu.concatenate %227, %228, %229, %230, %231 in 1 : vector<1x72xf32>, vector<1x72xf32>, vector<1x72xf32>, vector<1x72xf32>, vector<1x72xf32> -> vector<1x360xf32>
    %233 = vector.extract_strided_slice %148 {offsets = [84, 0], sizes = [1, 72], strides = [1, 1]} : vector<95x72xf32> to vector<1x72xf32>
    %234 = vector.extract_strided_slice %148 {offsets = [86, 0], sizes = [1, 72], strides = [1, 1]} : vector<95x72xf32> to vector<1x72xf32>
    %235 = vector.extract_strided_slice %148 {offsets = [88, 0], sizes = [1, 72], strides = [1, 1]} : vector<95x72xf32> to vector<1x72xf32>
    %236 = vector.extract_strided_slice %148 {offsets = [90, 0], sizes = [1, 72], strides = [1, 1]} : vector<95x72xf32> to vector<1x72xf32>
    %237 = vector.extract_strided_slice %148 {offsets = [92, 0], sizes = [1, 72], strides = [1, 1]} : vector<95x72xf32> to vector<1x72xf32>
    %238 = tpu.concatenate %233, %234, %235, %236, %237 in 1 : vector<1x72xf32>, vector<1x72xf32>, vector<1x72xf32>, vector<1x72xf32>, vector<1x72xf32> -> vector<1x360xf32>
    %239 = vector.extract_strided_slice %148 {offsets = [86, 0], sizes = [1, 72], strides = [1, 1]} : vector<95x72xf32> to vector<1x72xf32>
    %240 = vector.extract_strided_slice %148 {offsets = [88, 0], sizes = [1, 72], strides = [1, 1]} : vector<95x72xf32> to vector<1x72xf32>
    %241 = vector.extract_strided_slice %148 {offsets = [90, 0], sizes = [1, 72], strides = [1, 1]} : vector<95x72xf32> to vector<1x72xf32>
    %242 = vector.extract_strided_slice %148 {offsets = [92, 0], sizes = [1, 72], strides = [1, 1]} : vector<95x72xf32> to vector<1x72xf32>
    %243 = vector.extract_strided_slice %148 {offsets = [94, 0], sizes = [1, 72], strides = [1, 1]} : vector<95x72xf32> to vector<1x72xf32>
    %244 = tpu.concatenate %239, %240, %241, %242, %243 in 1 : vector<1x72xf32>, vector<1x72xf32>, vector<1x72xf32>, vector<1x72xf32>, vector<1x72xf32> -> vector<1x360xf32>
    %245 = tpu.concatenate %154, %160, %166, %172, %178, %184, %190, %196, %202, %208, %214, %220, %226, %232, %238, %244 in 0 : vector<1x360xf32>, vector<1x360xf32>, vector<1x360xf32>, vector<1x360xf32>, vector<1x360xf32>, vector<1x360xf32>, vector<1x360xf32>, vector<1x360xf32>, vector<1x360xf32>, vector<1x360xf32>, vector<1x360xf32>, vector<1x360xf32>, vector<1x360xf32>, vector<1x360xf32>, vector<1x360xf32>, vector<1x360xf32> -> vector<16x360xf32>
    %c0_121 = arith.constant 0 : index
    %c0_122 = arith.constant 0 : index
    %246 = vector.load %arg4[%c0_121, %c0_122] : memref<360x32xf32, #tpu.memory_space<vmem>>, vector<360x32xf32>
    %cst_123 = arith.constant dense<0.000000e+00> : vector<16x32xf32>
    %247 = tpu.matmul %245, %246, %cst_123 {dimension_numbers = #tpu.dot_dimension_numbers<[1], [0], [0], [1], [0, 0, 1, 1], [], []>} : vector<16x360xf32>, vector<360x32xf32>, vector<16x32xf32> -> vector<16x32xf32>
    %c0_124 = arith.constant 0 : index
    %c0_125 = arith.constant 0 : index
    %248 = vector.load %arg5[%c0_124, %c0_125] : memref<3x32xf32, #tpu.memory_space<vmem>>, vector<1x32xf32>
    %249 = vector.broadcast %248 : vector<1x32xf32> to vector<16x32xf32>
    %250 = arith.addf %247, %249 : vector<16x32xf32>
    %cst_126 = arith.constant 0.000000e+00 : f32
    %251 = vector.broadcast %cst_126 : f32 to vector<16x32xf32>
    %252 = arith.maximumf %250, %251 : vector<16x32xf32>
    %c1_127 = arith.constant 1 : index
    %c0_128 = arith.constant 0 : index
    %253 = vector.load %arg5[%c1_127, %c0_128] : memref<3x32xf32, #tpu.memory_space<vmem>>, vector<1x32xf32>
    %254 = vector.broadcast %253 : vector<1x32xf32> to vector<16x32xf32>
    %255 = arith.mulf %252, %254 : vector<16x32xf32>
    %c2_129 = arith.constant 2 : index
    %c0_130 = arith.constant 0 : index
    %256 = vector.load %arg5[%c2_129, %c0_130] : memref<3x32xf32, #tpu.memory_space<vmem>>, vector<1x32xf32>
    %257 = vector.broadcast %256 : vector<1x32xf32> to vector<16x32xf32>
    %258 = arith.addf %255, %257 : vector<16x32xf32>
    %259 = vector.extract_strided_slice %258 {offsets = [0, 1], sizes = [16, 31], strides = [1, 1]} : vector<16x32xf32> to vector<16x31xf32>
    %260 = vector.extract_strided_slice %258 {offsets = [0, 0], sizes = [16, 1], strides = [1, 1]} : vector<16x32xf32> to vector<16x1xf32>
    %261 = tpu.concatenate %259, %260 in 1 : vector<16x31xf32>, vector<16x1xf32> -> vector<16x32xf32>
    %262 = arith.maximumf %258, %261 : vector<16x32xf32>
    %263 = vector.extract_strided_slice %262 {offsets = [0, 0], sizes = [15, 32], strides = [1, 1]} : vector<16x32xf32> to vector<15x32xf32>
    %264 = vector.extract_strided_slice %262 {offsets = [1, 0], sizes = [15, 32], strides = [1, 1]} : vector<16x32xf32> to vector<15x32xf32>
    %265 = arith.maximumf %263, %264 : vector<15x32xf32>
    %266 = vector.extract_strided_slice %265 {offsets = [0, 0], sizes = [1, 32], strides = [1, 1]} : vector<15x32xf32> to vector<1x32xf32>
    %267 = vector.extract_strided_slice %265 {offsets = [2, 0], sizes = [1, 32], strides = [1, 1]} : vector<15x32xf32> to vector<1x32xf32>
    %268 = vector.extract_strided_slice %265 {offsets = [4, 0], sizes = [1, 32], strides = [1, 1]} : vector<15x32xf32> to vector<1x32xf32>
    %269 = vector.extract_strided_slice %265 {offsets = [6, 0], sizes = [1, 32], strides = [1, 1]} : vector<15x32xf32> to vector<1x32xf32>
    %270 = vector.extract_strided_slice %265 {offsets = [8, 0], sizes = [1, 32], strides = [1, 1]} : vector<15x32xf32> to vector<1x32xf32>
    %271 = vector.extract_strided_slice %265 {offsets = [10, 0], sizes = [1, 32], strides = [1, 1]} : vector<15x32xf32> to vector<1x32xf32>
    %272 = vector.extract_strided_slice %265 {offsets = [12, 0], sizes = [1, 32], strides = [1, 1]} : vector<15x32xf32> to vector<1x32xf32>
    %273 = vector.extract_strided_slice %265 {offsets = [14, 0], sizes = [1, 32], strides = [1, 1]} : vector<15x32xf32> to vector<1x32xf32>
    %274 = tpu.concatenate %266, %267, %268, %269, %270, %271, %272, %273 in 0 : vector<1x32xf32>, vector<1x32xf32>, vector<1x32xf32>, vector<1x32xf32>, vector<1x32xf32>, vector<1x32xf32>, vector<1x32xf32>, vector<1x32xf32> -> vector<8x32xf32>
    %c0_131 = arith.constant 0 : index
    %c0_132 = arith.constant 0 : index
    %275 = vector.load %arg6[%c0_131, %c0_132] : memref<32x16xf32, #tpu.memory_space<vmem>>, vector<32x16xf32>
    %cst_133 = arith.constant dense<0.000000e+00> : vector<8x16xf32>
    %276 = tpu.matmul %274, %275, %cst_133 {dimension_numbers = #tpu.dot_dimension_numbers<[1], [0], [0], [1], [0, 0, 1, 1], [], []>} : vector<8x32xf32>, vector<32x16xf32>, vector<8x16xf32> -> vector<8x16xf32>
    %277 = vector.extract_strided_slice %276 {offsets = [0, 0], sizes = [1, 16], strides = [1, 1]} : vector<8x16xf32> to vector<1x16xf32>
    %278 = vector.extract_strided_slice %276 {offsets = [1, 0], sizes = [1, 16], strides = [1, 1]} : vector<8x16xf32> to vector<1x16xf32>
    %279 = vector.extract_strided_slice %276 {offsets = [2, 0], sizes = [1, 16], strides = [1, 1]} : vector<8x16xf32> to vector<1x16xf32>
    %280 = vector.extract_strided_slice %276 {offsets = [3, 0], sizes = [1, 16], strides = [1, 1]} : vector<8x16xf32> to vector<1x16xf32>
    %281 = vector.extract_strided_slice %276 {offsets = [4, 0], sizes = [1, 16], strides = [1, 1]} : vector<8x16xf32> to vector<1x16xf32>
    %282 = vector.extract_strided_slice %276 {offsets = [5, 0], sizes = [1, 16], strides = [1, 1]} : vector<8x16xf32> to vector<1x16xf32>
    %283 = vector.extract_strided_slice %276 {offsets = [6, 0], sizes = [1, 16], strides = [1, 1]} : vector<8x16xf32> to vector<1x16xf32>
    %284 = vector.extract_strided_slice %276 {offsets = [7, 0], sizes = [1, 16], strides = [1, 1]} : vector<8x16xf32> to vector<1x16xf32>
    %285 = tpu.concatenate %277, %278, %279, %280, %281, %282, %283, %284 in 1 : vector<1x16xf32>, vector<1x16xf32>, vector<1x16xf32>, vector<1x16xf32>, vector<1x16xf32>, vector<1x16xf32>, vector<1x16xf32>, vector<1x16xf32> -> vector<1x128xf32>
    %c0_134 = arith.constant 0 : index
    %c0_135 = arith.constant 0 : index
    %c0_136 = arith.constant 0 : index
    %286 = vector.load %arg7[%c0_134, %c0_135, %c0_136] : memref<1x1x128xf32, #tpu.memory_space<vmem>>, vector<1x1x128xf32>
    %287 = vector.shape_cast %286 : vector<1x1x128xf32> to vector<1x128xf32>
    %288 = vector.shape_cast %285 : vector<1x128xf32> to vector<1x1x128xf32>
    tpu.vector_store %arg7[%c0_134, %c0_135, %c0_136], %288 {strides = array<i32>} : memref<1x1x128xf32, #tpu.memory_space<vmem>>, vector<1x1x128xf32>,
    return
  }
  func.func @transform_0(%arg0: i32) -> (i32, i32, i32) {
    %c0_i32 = arith.constant 0 : i32
    %c0_i32_0 = arith.constant 0 : i32
    %c0_i32_1 = arith.constant 0 : i32
    return %arg0, %c0_i32, %c0_i32_0 : i32, i32, i32
  }
  func.func @transform_1(%arg0: i32) -> (i32, i32) {
    %c0_i32 = arith.constant 0 : i32
    %c0_i32_0 = arith.constant 0 : i32
    %c0_i32_1 = arith.constant 0 : i32
    return %c0_i32, %c0_i32_0 : i32, i32
  }
  func.func @transform_2(%arg0: i32) -> (i32, i32) {
    %c0_i32 = arith.constant 0 : i32
    %c0_i32_0 = arith.constant 0 : i32
    %c0_i32_1 = arith.constant 0 : i32
    return %c0_i32, %c0_i32_0 : i32, i32
  }
  func.func @transform_3(%arg0: i32) -> (i32, i32) {
    %c0_i32 = arith.constant 0 : i32
    %c0_i32_0 = arith.constant 0 : i32
    %c0_i32_1 = arith.constant 0 : i32
    return %c0_i32, %c0_i32_0 : i32, i32
  }
  func.func @transform_4(%arg0: i32) -> (i32, i32) {
    %c0_i32 = arith.constant 0 : i32
    %c0_i32_0 = arith.constant 0 : i32
    %c0_i32_1 = arith.constant 0 : i32
    return %c0_i32, %c0_i32_0 : i32, i32
  }
  func.func @transform_5(%arg0: i32) -> (i32, i32) {
    %c0_i32 = arith.constant 0 : i32
    %c0_i32_0 = arith.constant 0 : i32
    %c0_i32_1 = arith.constant 0 : i32
    return %c0_i32, %c0_i32_0 : i32, i32
  }
  func.func @transform_6(%arg0: i32) -> (i32, i32, i32) {
    %c0_i32 = arith.constant 0 : i32
    %c0_i32_0 = arith.constant 0 : i32
    %c0_i32_1 = arith.constant 0 : i32
    return %arg0, %c0_i32, %c0_i32_0 : i32, i32, i32
  }
}

</mosaic_0001>

<bundles_post_ra>
// kernel: lenet_feature_extractor.1
= control target key start
LH: loop header
LB: loop body
LE: loop exit
PB: predicated region body
PF: predicated region fallthrough
CT: control target
= control target key end

     0   :  { %s2252_s21 = smov 0   ;;  %s3271_s0 = inlined_call_operand.vmem [shape: f32[16,16,48], index: 0, kind: input, shape index: {}]   ;;  %s3272_s1 = inlined_call_operand.vmem [shape: f32[240,72], index: 1, kind: input, shape index: {}]   ;;  %s3273_s2 = inlined_call_operand.vmem [shape: f32[3,72], index: 2, kind: input, shape index: {}]   ;;  %s3274_s3 = inlined_call_operand.vmem [shape: f32[360,32], index: 3, kind: input, shape index: {}]   ;;  %s3275_s4 = inlined_call_operand.vmem [shape: f32[3,32], index: 4, kind: input, shape index: {}]   ;;  %s3276_s5 = inlined_call_operand.vmem [shape: f32[32,16], index: 5, kind: input, shape index: {}]   ;;  %s3277_s6 = inlined_call_operand.vmem [shape: f32[2,1,128], index: 6, kind: output, shape index: {}]  }
   0x1 LB: > { %s2258_s22 = sadd.s32 4294967295, %s2201_s21   ;;  %p1943_p0 = scmp.ge.s32.totalorder %s2201_s21, 1  ;;  %s2201_s21 = sphi %s2252_s21, %s16_s21  }
   0x2   : > { %p214_p1 = scmp.lt.s32.totalorder %s2201_s21, 3 }
   0x4   : > { %p215_p2 = pnand %p1943_p0, %p214_p1 }
   0x5   : > { %s1944_s23 = sshll.u32 (!%p215_p2), %s2258_s22, 3  ;;  %s2204_s16 = smov (!%p215_p2), 96  }
   0x6   : > { %218 = sbr.rel (%p215_p2) target bundleno = 1374 (0x55e), region = 44  ;;  %p244_p3 = scmp.lt.s32.totalorder (!%p215_p2), %s1944_s23, 15 }
   0x7   : > { %s2205_s19 = smov (!%p215_p2), 48   ;;  %s2206_s24 = smov (!%p215_p2), 16  }
   0x8   : > { %s2207_s27 = smov (!%p215_p2), 64   ;;  %s2208_s20 = smov (!%p215_p2), 127  }
   0x9   : > { %s2210_s25 = smov (!%p215_p2), 88   ;;  %s2211_s26 = smov (!%p215_p2), 32  }
   0xa   : > { %s2212_s8 = smov (!%p215_p2), 72   ;;  %s2214_s15 = smov (!%p215_p2), 31  }
   0xb   : > { %v727_v0 = vld [vmem:[%s3272_s1 + $0x78] sm:$0xff]  ;;  %v2203_v1 = vmov 0.0   ;;  %v726_v2 = vld [vmem:[%s3272_s1 + $0x70] sm:$0xff]  ;;  %s3279_s23 = smov (!%p244_p3, %s1944_s23), 15  ;;  %v725_v3 = vld [vmem:[%s3272_s1 + $0x68] sm:$0xff]  ;;  %vm267_vm0 = vcmask 1045504  }
   0xc   : > { %780 = vmatprep.subr.mxu0 %v2203_v1  ;;  %s1984_s30 = sshll.u32 %s3279_s23, 4  ;;  %v724_v4 = vld [vmem:[%s3272_s1 + $0x60] sm:$0xff]  ;;  %vm257_vm1 = vcmask 1046528   ;;  %vm277_vm2 = vcmask 1044480   ;;  %v723_v13 = vld [vmem:[%s3272_s1 + $0x58] sm:$0xff]  ;;  %v722_v20 = vld [vmem:[%s3272_s1 + $0x50] sm:$0xff] }
   0xd   : > { %781 = vmatpush1.msra.mxu0 %v727_v0  ;;  %s2277_s9 = scalar_lea.vmem %s3271_s0, %s1984_s30  ;;  %vm287_vm3 = vcmask 1043456   ;;  %v721_v28 = vld [vmem:[%s3272_s1 + $0x48] sm:$0xff]  ;;  %v720_v29 = vld [vmem:[%s3272_s1 + $0x40] sm:$0xff]  ;;  %v719_v36 = vld [vmem:[%s3272_s1 + $0x38] sm:$0xff]  ;;  %vm303_vm4 = vcmask 130048   ;;  %vm297_vm5 = vcmask 392192  }
   0xe   : > { %782 = vmatprep.subr.mxu0 %v2203_v1  ;;  %v2284_v5 = vld [vmem:[%s2277_s9] sm:$0xff]  ;;  %v2287_v6 = vld [vmem:[%s2277_s9 + $0x8] sm:$0xff]  ;;  %v2290_v7 = vld [vmem:[%s2277_s9 + $0x10] sm:$0xff]  ;;  %vm306_vm6 = vcmask 523264   ;;  %vm300_vm7 = vcmask 785408   ;;  %vm747_vm8 = vcmask 916480  }
   0xf   : > { %783 = vmatpush1.msra.mxu0 %v726_v2  ;;  %v268_v8 = vrot.slane %v2284_v5, 2  ;;  %v269_v9 = vrot.slane %v2287_v6, 2  ;;  %v258_v10 = vrot.slane %v2284_v5, 1  ;;  %v259_v11 = vrot.slane %v2287_v6, 1  ;;  %v2297_v12 = vld [vmem:[%s2277_s9 + $0x18] sm:$0xff]  ;;  %v718_v37 = vld [vmem:[%s3272_s1 + $0x30] sm:$0xff] }
  0x10   : > { %784 = vmatprep.subr.mxu0 %v2203_v1  ;;  %v314_v14 = vrot.slane %v2290_v7, 1  ;;  %v315_v15 = vrot.slane %v2297_v12, 1  ;;  %v278_v16 = vrot.slane %v2284_v5, 3  ;;  %v279_v17 = vrot.slane %v2287_v6, 3  ;;  %v717_v40 = vld [vmem:[%s3272_s1 + $0x28] sm:$0xff]  ;;  %v716_v41 = vld [vmem:[%s3272_s1 + $0x20] sm:$0xff] }
  0x11   : > { %785 = vmatpush1.msra.mxu0 %v725_v3  ;;  %v270_v18 = vsel %vm267_vm0, %v268_v8, %v269_v9  ;;  %v260_v19 = vsel %vm257_vm1, %v258_v10, %v259_v11  ;;  %v288_v22 = vrot.slane %v2284_v5, 4  ;;  %v289_v23 = vrot.slane %v2287_v6, 4  ;;  %v715_v42 = vld [vmem:[%s3272_s1 + $0x18] sm:$0xff]  ;;  %v714_v44 = vld [vmem:[%s3272_s1 + $0x10] sm:$0xff]  ;;  %v2379_v45 = vld [vmem:[%s2277_s9 + $0x20] sm:$0xff]  ;;  %s2209_s23 = smov 71  }
  0x12   : > { %786 = vmatprep.subr.mxu0 %v2203_v1  ;;  %271 = vrot.lane.b32.xlu0 %v270_v18, %s2204_s16  ;;  %v316_v21 = vsel %vm257_vm1, %v314_v14, %v315_v15  ;;  %v280_v25 = vsel %vm277_vm2, %v278_v16, %v279_v17  ;;  %v323_v26 = vrot.slane %v2290_v7, 2  ;;  %v324_v27 = vrot.slane %v2297_v12, 2  ;;  %v2382_v46 = vld [vmem:[%s2277_s9 + $0x28] sm:$0xff]  ;;  %v2389_v48 = vld [vmem:[%s2277_s9 + $0x30] sm:$0xff]  ;;  %v2392_v49 = vld [vmem:[%s2277_s9 + $0x38] sm:$0xff]  ;;  %s2215_s28 = smov 80  }
  0x13   : > { %787 = vmatpush1.msra.mxu0 %v724_v4  ;;  %v2105_v24 = vpack.i.bf16 %v316_v21, %v260_v19  ;;  %v290_v30 = vsel %vm287_vm3, %v288_v22, %v289_v23  ;;  %v332_v31 = vrot.slane %v2290_v7, 3  ;;  %v333_v32 = vrot.slane %v2297_v12, 3  ;;  %v713_v47 = vld [vmem:[%s3272_s1 + $0x8] sm:$0xff]  ;;  %v712_v50 = vld [vmem:[%s3272_s1] sm:$0xff]  ;;  %v739_v0 = vld [vmem:[%s3272_s1 + $0xd8] sm:$0xff]  ;;  %s2216_s29 = smov 112  }
  0x14   : > { %788 = vmatprep.subr.mxu0 %v2203_v1  ;;  %v325_v33 = vsel %vm267_vm0, %v323_v26, %v324_v27  ;;  %v341_v34 = vrot.slane %v2290_v7, 4  ;;  %v342_v35 = vrot.slane %v2297_v12, 4  ;;  %v2110_v43 = vpack.i.bf16 %v315_v15, %v259_v11  ;;  %v741_v57 = vld [vmem:[%s3272_s1 + $0xe8] sm:$0xff]  ;;  %v740_v58 = vld [vmem:[%s3272_s1 + $0xe0] sm:$0xff]  ;;  %v738_v2 = vld [vmem:[%s3272_s1 + $0xd0] sm:$0xff]  ;;  %p250_p4 = scmp.lt.s32.totalorder %s2258_s22, 1 }
  0x15   : > { %789 = vmatpush1.msra.mxu0 %v723_v13  ;;  %2106 = vrot.lane.b32.xlu1 %v2105_v24, %s2205_s19  ;;  %v334_v38 = vsel %vm277_vm2, %v332_v31, %v333_v32  ;;  %v372_v51 = vrot.slane %v2379_v45, 2  ;;  %v373_v52 = vrot.slane %v2382_v46, 2  ;;  %v363_v53 = vrot.slane %v2379_v45, 1  ;;  %v737_v13 = vld [vmem:[%s3272_s1 + $0xc8] sm:$0xff]  ;;  %v736_v14 = vld [vmem:[%s3272_s1 + $0xc0] sm:$0xff]  ;;  %v735_v21 = vld [vmem:[%s3272_s1 + $0xb8] sm:$0xff] }
  0x16   : > { %790 = vmatprep.subr.mxu0 %v2203_v1  ;;  %281 = vrot.lane.b32.xlu0 %v280_v25, %s2206_s24  ;;  %v343_v39 = vsel %vm287_vm3, %v341_v34, %v342_v35  ;;  %v364_v54 = vrot.slane %v2382_v46, 1  ;;  %v412_v55 = vrot.slane %v2389_v48, 1  ;;  %v413_v56 = vrot.slane %v2392_v49, 1  ;;  %v734_v22 = vld [vmem:[%s3272_s1 + $0xb0] sm:$0xff]  ;;  %v733_v25 = vld [vmem:[%s3272_s1 + $0xa8] sm:$0xff]  ;;  %v732_v26 = vld [vmem:[%s3272_s1 + $0xa0] sm:$0xff] }
  0x17   : > { %791 = vmatpush1.msra.mxu0 %v722_v20  ;;  %v381_v59 = vrot.slane %v2379_v45, 3  ;;  %v382_v60 = vrot.slane %v2382_v46, 3  ;;  %v374_v61 = vsel %vm267_vm0, %v372_v51, %v373_v52  ;;  %v390_v8 = vrot.slane %v2379_v45, 4  ;;  %v2502_v31 = vld [vmem:[%s2277_s9 + $0x48] sm:$0xff]  ;;  %v2512_v34 = vld [vmem:[%s2277_s9 + $0x58] sm:$0xff]  ;;  %s3281_s22 = smov (!%p250_p4, %s2258_s22), 1 }
  0x18   : > { %792 = vmatprep.subr.mxu0 %v2203_v1  ;;  %v365_v62 = vsel %vm257_vm1, %v363_v53, %v364_v54  ;;  %v414_v63 = vsel %vm257_vm1, %v412_v55, %v413_v56  ;;  %v421_v10 = vrot.slane %v2389_v48, 2  ;;  %v422_v11 = vrot.slane %v2392_v49, 2 }
  0x19   : > { %793 = vmatpush1.msra.mxu0 %v721_v28  ;;  %291 = vrot.lane.b32.xlu1 %v290_v30, %s2207_s27  ;;  %v383_v3 = vsel %vm277_vm2, %v381_v59, %v382_v60  ;;  %v2115_v4 = vpack.i.bf16 %v414_v63, %v365_v62  ;;  %v430_v16 = vrot.slane %v2389_v48, 3  ;;  %v439_v19 = vrot.slane %v2389_v48, 4  ;;  %v2499_v30 = vld [vmem:[%s2277_s9 + $0x40] sm:$0xff] }
  0x1a   : > { %794 = vmatprep.subr.mxu0 %v2203_v1  ;;  %326 = vrot.lane.b32.xlu0 %v325_v33, %s2204_s16  ;;  %v423_v18 = vsel %vm267_vm0, %v421_v10, %v422_v11  ;;  %v440_v20 = vrot.slane %v2392_v49, 4  ;;  %v2120_v28 = vpack.i.bf16 %v413_v56, %v364_v54  ;;  %v2509_v33 = vld [vmem:[%s2277_s9 + $0x50] sm:$0xff]  ;;  %v488_v53 = vrot.slane %v2499_v30, 4 }
  0x1b   : > { %795 = vmatpush1.msra.mxu0 %v720_v29  ;;  %v730_v29 = vld [vmem:[%s3272_s1 + $0x90] sm:$0xff]  ;;  %v489_v54 = vrot.slane %v2502_v31, 4  ;;  %v519_v55 = vrot.slane %v2509_v33, 2  ;;  %v520_v56 = vrot.slane %v2512_v34, 2  ;;  %v529_v59 = vrot.slane %v2512_v34, 3 }
  0x1c   : > { %796 = vmatprep.subr.mxu0 %v2203_v1  ;;  %v441_v24 = vsel %vm287_vm3, %v439_v19, %v440_v20  ;;  %v538_v62 = vrot.slane %v2512_v34, 4  ;;  %vm1035_vm9 = vcmask 580608   ;;  %vm1141_vm10 = vcmask 261120  }
  0x1d   : > { %797 = vmatpush1.msra.mxu0 %v719_v36  ;;  %335 = vrot.lane.b32.xlu1 %v334_v38, %s2206_s24  ;;  %v470_v36 = vrot.slane %v2499_v30, 2  ;;  %v461_v38 = vrot.slane %v2499_v30, 1  ;;  %vm1458_vm11 = vcmask 1040384   ;;  %vm1466_vm12 = vcmask 1042432  }
  0x1e   : > { %798 = vmatprep.subr.mxu0 %v2203_v1  ;;  %344 = vrot.lane.b32.xlu0 %v343_v39, %s2207_s27  ;;  %v462_v39 = vrot.slane %v2502_v31, 1  ;;  %vm1462_vm13 = vcmask 1041408   ;;  %vm1136_vm14 = vcmask 588800   ;;  %vm1139_vm15 = vcmask 719872  }
  0x1f   : > { %799 = vmatpush1.msra.mxu0 %v718_v37  ;;  %v471_v37 = vrot.slane %v2502_v31, 2 }
  0x20   : > { %800 = vmatprep.subr.mxu0 %v2203_v1 }
  0x21   : > { %801 = vmatpush1.msra.mxu0 %v717_v40  ;;  %273 = vrot.lane.b32.xlu1 %v269_v9, %s2204_s16  ;;  %v391_v9 = vrot.slane %v2382_v46, 4  ;;  %v510_v40 = vrot.slane %v2509_v33, 1 }
  0x22   : > { %802 = vmatprep.subr.mxu0 %v2203_v1  ;;  %283 = vrot.lane.b32.xlu0 %v279_v17, %s2206_s24  ;;  %v431_v17 = vrot.slane %v2392_v49, 3 }
  0x23   : > { %803 = vmatpush1.msra.mxu0 %v716_v41  ;;  %v392_v15 = vsel %vm287_vm3, %v390_v8, %v391_v9  ;;  %v511_v41 = vrot.slane %v2512_v34, 1  ;;  %v2564_v8 = vld [vmem:[%s2277_s9 + $0x70] sm:$0xff] }
  0x24   : > { %804 = vmatprep.subr.mxu0 %v2203_v1 }
  0x25   : > { %805 = vmatpush1.msra.mxu0 %v715_v42  ;;  %2111 = vrot.lane.b32.xlu1 %v2110_v43, %s2205_s19  ;;  %v479_v42 = vrot.slane %v2499_v30, 3  ;;  %v480_v43 = vrot.slane %v2502_v31, 3 }
  0x26   : > { %806 = vmatprep.subr.mxu0 %v2203_v1  ;;  %293 = vrot.lane.b32.xlu0 %v289_v23, %s2207_s27  ;;  %v432_v23 = vsel %vm277_vm2, %v430_v16, %v431_v17 }
  0x27   : > { %807 = vmatpush1.msra.mxu0 %v714_v44  ;;  %v472_v44 = vsel %vm267_vm0, %v470_v36, %v471_v37  ;;  %v481_v51 = vsel %vm277_vm2, %v479_v42, %v480_v43  ;;  %v635_v36 = vrot.slane %v2564_v8, 4 }
  0x28   : > { %808 = vmatprep.subr.mxu0 %v2203_v1 }
  0x29   : > { %809 = vmatpush1.msra.mxu0 %v713_v47  ;;  %328 = vrot.lane.b32.xlu1 %v324_v27, %s2204_s16  ;;  %v731_v27 = vld [vmem:[%s3272_s1 + $0x98] sm:$0xff]  ;;  %v463_v47 = vsel %vm257_vm1, %v461_v38, %v462_v39 }
  0x2a   : > { %810 = vmatprep.subr.mxu0 %v2203_v1  ;;  %337 = vrot.lane.b32.xlu0 %v333_v32, %s2206_s24  ;;  %v729_v32 = vld [vmem:[%s3272_s1 + $0x88] sm:$0xff] }
  0x2b   : > { %811 = vmatpush1.msra.mxu0 %v712_v50  ;;  %v512_v50 = vsel %vm257_vm1, %v510_v40, %v511_v41 }
  0x2c   : > { %816 = vmatprep.subr.mxu0 %v2203_v1 }
  0x2d   : > { %817 = vmatpush2.msra.mxu0 %v741_v57  ;;  %346 = vrot.lane.b32.xlu1 %v342_v35, %s2207_s27  ;;  %v728_v35 = vld [vmem:[%s3272_s1 + $0x80] sm:$0xff]  ;;  %v490_v57 = vsel %vm287_vm3, %v488_v53, %v489_v54 }
  0x2e   : > { %818 = vmatprep.subr.mxu0 %v2203_v1  ;;  %375 = vrot.lane.b32.xlu0 %v374_v61, %s2204_s16  ;;  %v537_v61 = vrot.slane %v2509_v33, 4 }
  0x2f   : > { %819 = vmatpush2.msra.mxu0 %v740_v58  ;;  %v528_v58 = vrot.slane %v2509_v33, 3 }
  0x30   : > { %820 = vmatprep.subr.mxu0 %v2203_v1 }
  0x31   : > { %821 = vmatpush2.msra.mxu0 %v739_v0  ;;  %384 = vrot.lane.b32.xlu1 %v383_v3, %s2206_s24  ;;  %v530_v63 = vsel %vm277_vm2, %v528_v58, %v529_v59  ;;  %v539_v0 = vsel %vm287_vm3, %v537_v61, %v538_v62  ;;  %v2558_v3 = vld [vmem:[%s2277_s9 + $0x60] sm:$0xff] }
  0x32   : > { %822 = vmatprep.subr.mxu0 %v2203_v1  ;;  %2116 = vrot.lane.b32.xlu0 %v2115_v4, %s2205_s19  ;;  %v2561_v4 = vld [vmem:[%s2277_s9 + $0x68] sm:$0xff]  ;;  %v568_v10 = vrot.slane %v2558_v3, 2 }
  0x33   : > { %823 = vmatpush2.msra.mxu0 %v738_v2  ;;  %v2130_v2 = vpack.i.bf16 %v511_v41, %v462_v39 }
  0x34   : > { %824 = vmatprep.subr.mxu0 %v2203_v1 }
  0x35   : > { %825 = vmatpush2.msra.mxu0 %v737_v13  ;;  %393 = vrot.lane.b32.xlu1 %v392_v15, %s2207_s27  ;;  %v559_v13 = vrot.slane %v2558_v3, 1  ;;  %v608_v15 = vrot.slane %v2564_v8, 1 }
  0x36   : > { %826 = vmatprep.subr.mxu0 %v2203_v1  ;;  %424 = vrot.lane.b32.xlu0 %v423_v18, %s2204_s16  ;;  %v578_v18 = vrot.slane %v2561_v4, 3 }
  0x37   : > { %827 = vmatpush2.msra.mxu0 %v736_v14  ;;  %v560_v14 = vrot.slane %v2561_v4, 1 }
  0x38   : > { %828 = vmatprep.subr.mxu0 %v2203_v1 }
  0x39   : > { %829 = vmatpush2.msra.mxu0 %v735_v21  ;;  %433 = vrot.lane.b32.xlu1 %v432_v23, %s2206_s24 }
  0x3a   : > { %830 = vmatprep.subr.mxu0 %v2203_v1  ;;  %442 = vrot.lane.b32.xlu0 %v441_v24, %s2207_s27  ;;  %v586_v24 = vrot.slane %v2558_v3, 4 }
  0x3b   : > { %831 = vmatpush2.msra.mxu0 %v734_v22 }
  0x3c   : > { %832 = vmatprep.subr.mxu0 %v2203_v1 }
  0x3d   : > { %833 = vmatpush2.msra.mxu0 %v733_v25  ;;  %377 = vrot.lane.b32.xlu1 %v373_v52, %s2204_s16  ;;  %v2125_v52 = vpack.i.bf16 %v512_v50, %v463_v47  ;;  %v587_v25 = vrot.slane %v2561_v4, 4 }
  0x3e   : > { %834 = vmatprep.subr.mxu0 %v2203_v1  ;;  %386 = vrot.lane.b32.xlu0 %v382_v60, %s2206_s24  ;;  %v521_v60 = vsel %vm267_vm0, %v519_v55, %v520_v56 }
  0x3f   : > { %835 = vmatpush2.msra.mxu0 %v732_v26  ;;  %v617_v26 = vrot.slane %v2564_v8, 2 }
  0x40   : > { %836 = vmatprep.subr.mxu0 %v2203_v1 }
  0x41   : > { %837 = vmatpush2.msra.mxu0 %v731_v27  ;;  %2121 = vrot.lane.b32.xlu1 %v2120_v28, %s2205_s19  ;;  %v588_v28 = vsel %vm287_vm3, %v586_v24, %v587_v25 }
  0x42   : > { %838 = vmatprep.subr.mxu0 %v2203_v1  ;;  %395 = vrot.lane.b32.xlu0 %v391_v9, %s2207_s27  ;;  %v2567_v9 = vld [vmem:[%s2277_s9 + $0x78] sm:$0xff] }
  0x43   : > { %839 = vmatpush2.msra.mxu0 %v730_v29  ;;  %v609_v16 = vrot.slane %v2567_v9, 1  ;;  %v618_v27 = vrot.slane %v2567_v9, 2  ;;  %v626_v29 = vrot.slane %v2564_v8, 3 }
  0x44   : > { %840 = vmatprep.subr.mxu0 %v2203_v1 }
  0x45   : > { %841 = vmatpush2.msra.mxu0 %v729_v32  ;;  %426 = vrot.lane.b32.xlu1 %v422_v11, %s2204_s16  ;;  %v569_v11 = vrot.slane %v2561_v4, 2  ;;  %v610_v21 = vsel %vm257_vm1, %v608_v15, %v609_v16  ;;  %v627_v32 = vrot.slane %v2567_v9, 3  ;;  %v2140_v40 = vpack.i.bf16 %v609_v16, %v560_v14 }
  0x46   : > { %842 = vmatprep.subr.mxu0 %v2203_v1  ;;  %435 = vrot.lane.b32.xlu0 %v431_v17, %s2206_s24  ;;  %v577_v17 = vrot.slane %v2558_v3, 3 }
  0x47   : > { %843 = vmatpush2.msra.mxu0 %v728_v35  ;;  %v570_v19 = vsel %vm267_vm0, %v568_v10, %v569_v11  ;;  %v619_v35 = vsel %vm267_vm0, %v617_v26, %v618_v27  ;;  %v628_v38 = vsel %vm277_vm2, %v626_v29, %v627_v32 }
  0x48   : > { %v579_v22 = vsel %vm277_vm2, %v577_v17, %v578_v18 }
  0x49   : > { %444 = vrot.lane.b32.xlu1 %v440_v20, %s2207_s27  ;;  %v561_v20 = vsel %vm257_vm1, %v559_v13, %v560_v14 }
  0x4a   : > { %473 = vrot.lane.b32.xlu0 %v472_v44, %s2204_s16  ;;  %v2135_v23 = vpack.i.bf16 %v610_v21, %v561_v20 }
  0x4d   : > { %482 = vrot.lane.b32.xlu1 %v481_v51, %s2206_s24 }
  0x4e   : > { %2126 = vrot.lane.b32.xlu0 %v2125_v52, %s2205_s19 }
  0x51   : > { %491 = vrot.lane.b32.xlu1 %v490_v57, %s2207_s27 }
  0x52   : > { %522 = vrot.lane.b32.xlu0 %v521_v60, %s2204_s16 }
  0x55   : > { %531 = vrot.lane.b32.xlu1 %v530_v63, %s2206_s24 }
  0x56   : > { %540 = vrot.lane.b32.xlu0 %v539_v0, %s2207_s27 }
  0x59   : > { %475 = vrot.lane.b32.xlu1 %v471_v37, %s2204_s16  ;;  %v636_v37 = vrot.slane %v2567_v9, 4 }
  0x5a   : > { %484 = vrot.lane.b32.xlu0 %v480_v43, %s2206_s24 }
  0x5b   : > { %v637_v39 = vsel %vm287_vm3, %v635_v36, %v636_v37 }
  0x5d   : > { %2131 = vrot.lane.b32.xlu1 %v2130_v2, %s2205_s19 }
  0x5e   : > { %493 = vrot.lane.b32.xlu0 %v489_v54, %s2207_s27 }
  0x61   : > { %524 = vrot.lane.b32.xlu1 %v520_v56, %s2204_s16 }
  0x62   : > { %533 = vrot.lane.b32.xlu0 %v529_v59, %s2206_s24 }
  0x65   : > { %542 = vrot.lane.b32.xlu1 %v538_v62, %s2207_s27 }
  0x66   : > { %571 = vrot.lane.b32.xlu0 %v570_v19, %s2204_s16 }
  0x69   : > { %580 = vrot.lane.b32.xlu1 %v579_v22, %s2206_s24 }
  0x6a   : > { %2136 = vrot.lane.b32.xlu0 %v2135_v23, %s2205_s19 }
  0x6d   : > { %589 = vrot.lane.b32.xlu1 %v588_v28, %s2207_s27 }
  0x6e   : > { %620 = vrot.lane.b32.xlu0 %v619_v35, %s2204_s16 }
  0x71   : > { %629 = vrot.lane.b32.xlu1 %v628_v38, %s2206_s24 }
  0x72   : > { %638 = vrot.lane.b32.xlu0 %v637_v39, %s2207_s27 }
  0x75   : > { %573 = vrot.lane.b32.xlu1 %v569_v11, %s2204_s16 }
  0x76   : > { %582 = vrot.lane.b32.xlu0 %v578_v18, %s2206_s24 }
  0x79   : > { %2141 = vrot.lane.b32.xlu1 %v2140_v40, %s2205_s19 }
  0x7a   : > { %591 = vrot.lane.b32.xlu0 %v587_v25, %s2207_s27 }
  0x7d   : > { %622 = vrot.lane.b32.xlu1 %v618_v27, %s2204_s16 }
  0x7e   : > { %631 = vrot.lane.b32.xlu0 %v627_v32, %s2206_s24 }
  0x81   : > { %640 = vrot.lane.b32.xlu1 %v636_v37, %s2207_s27 }
  0x84   : > { %v272_v41 = vpop.permute.xlu0 %271 }
  0x87   : > { %v2107_v42 = vpop.permute.xlu1 %2106 }
  0x88   : > { %v2108_v43 = vunpack.i.l.bf16 %v2107_v42  ;;  %v282_v44 = vpop.permute.xlu0 %281  ;;  %v2109_v57 = vunpack.i.h.bf16 %v2107_v42 }
  0x89   : > { %v304_v47 = vsel %vm303_vm4, %v272_v41, %v282_v44 }
  0x8a   : > { %v298_v50 = vsel %vm297_vm5, %v2284_v5, %v2108_v43  ;;  %v350_v5 = vsel %vm297_vm5, %v2290_v7, %v2109_v57 }
  0x8b   : > { %v292_v51 = vpop.permute.xlu1 %291  ;;  %v301_v54 = vsel %vm300_vm7, %v298_v50, %v272_v41 }
  0x8c   : > { %v327_v52 = vpop.permute.xlu0 %326  ;;  %v307_v53 = vsel %vm306_vm6, %v304_v47, %v292_v51 }
  0x8d   : > { %1962 = vmatprep.mubr.msk.f32.mxu0 %vm747_vm8, %v307_v53  ;;  %v352_v62 = vsel %vm300_vm7, %v350_v5, %v327_v52 }
  0x8e   : > { %845 = vmatmul.mubr.f32.vlgmr.msra.gmra.mxu0 %v301_v54  ;;  %v656_v15 = vrot.slane %v352_v62, 4 }
  0x8f   : > { %v336_v55 = vpop.permute.xlu1 %335 }
  0x90   : > { %v345_v56 = vpop.permute.xlu0 %344  ;;  %v354_v58 = vsel %vm303_vm4, %v327_v52, %v336_v55 }
  0x91   : > { %v356_v61 = vsel %vm306_vm6, %v354_v58, %v345_v56 }
  0x92   : > { %v657_v0 = vrot.slane %v356_v61, 4 }
  0x93   : > { %v274_v59 = vpop.permute.xlu1 %273 }
  0x94   : > { %v284_v60 = vpop.permute.xlu0 %283 }
  0x95   : > { %v305_v2 = vsel %vm303_vm4, %v274_v59, %v284_v60 }
  0x97   : > { %v2112_v63 = vpop.permute.xlu1 %2111 }
  0x98   : > { %v2114_v10 = vunpack.i.h.bf16 %v2112_v63  ;;  %v2113_v11 = vunpack.i.l.bf16 %v2112_v63  ;;  %v294_v13 = vpop.permute.xlu0 %293 }
  0x99   : > { %v308_v14 = vsel %vm306_vm6, %v305_v2, %v294_v13 }
  0x9a   : > { %v351_v16 = vsel %vm297_vm5, %v2297_v12, %v2114_v10  ;;  %v705_v17 = vsel %vm287_vm3, %v308_v14, %v657_v0  ;;  %v299_v7 = vsel %vm297_vm5, %v2287_v6, %v2113_v11 }
  0x9b   : > { %v329_v18 = vpop.permute.xlu1 %328  ;;  %1963 = vmatprep.mubr.msk.f32.mxu0 %vm747_vm8, %v705_v17  ;;  %v302_v19 = vsel %vm300_vm7, %v299_v7, %v274_v59 }
  0x9c   : > { %v338_v20 = vpop.permute.xlu0 %337  ;;  %v704_v21 = vsel %vm287_vm3, %v302_v19, %v656_v15  ;;  %v353_v22 = vsel %vm300_vm7, %v351_v16, %v329_v18 }
  0x9d   : > { %v355_v23 = vsel %vm303_vm4, %v329_v18, %v338_v20  ;;  %850 = vmatmul.mubr.f32.gmra.mxu0 %v704_v21  ;;  %v658_v12 = vrot.slane %v353_v22, 4 }
  0x9f   : > { %v347_v24 = vpop.permute.xlu1 %346  ;;  %v659_v32 = vsel %vm287_vm3, %v656_v15, %v658_v12 }
  0xa0   : > { %v357_v25 = vsel %vm306_vm6, %v355_v23, %v347_v24  ;;  %v376_v26 = vpop.permute.xlu0 %375 }
  0xa1   : > { %v660_v27 = vrot.slane %v357_v25, 4 }
  0xa3   : > { %v385_v6 = vpop.permute.xlu1 %384  ;;  %v661_v28 = vsel %vm287_vm3, %v657_v0, %v660_v27 }
  0xa4   : > { %1964 = vmatprep.mubr.msk.f32.mxu0 %vm747_vm8, %v661_v28  ;;  %v2117_v29 = vpop.permute.xlu0 %2116  ;;  %v403_v36 = vsel %vm303_vm4, %v376_v26, %v385_v6 }
  0xa5   : > { %v2118_v35 = vunpack.i.l.bf16 %v2117_v29  ;;  %855 = vmatmul.mubr.f32.gmra.mxu0 %v659_v32  ;;  %v2119_v43 = vunpack.i.h.bf16 %v2117_v29 }
  0xa7   : > { %v394_v37 = vpop.permute.xlu1 %393  ;;  %v399_v38 = vsel %vm297_vm5, %v2379_v45, %v2118_v35  ;;  %v448_v51 = vsel %vm297_vm5, %v2389_v48, %v2119_v43 }
  0xa8   : > { %v405_v39 = vsel %vm306_vm6, %v403_v36, %v394_v37  ;;  %v425_v40 = vpop.permute.xlu0 %424  ;;  %v401_v41 = vsel %vm300_vm7, %v399_v38, %v376_v26 }
  0xa9   : > { %1965 = vmatprep.mubr.msk.f32.mxu0 %vm747_vm8, %v405_v39  ;;  %v450_v53 = vsel %vm300_vm7, %v448_v51, %v425_v40 }
  0xaa   : > { %860 = vmatmul.mubr.f32.gmra.mxu0 %v401_v41  ;;  %v669_v61 = vrot.slane %v450_v53, 4 }
  0xab   : > { %v434_v42 = vpop.permute.xlu1 %433 }
  0xac   : > { %v443_v44 = vpop.permute.xlu0 %442  ;;  %v452_v47 = vsel %vm303_vm4, %v425_v40, %v434_v42 }
  0xad   : > { %v454_v45 = vsel %vm306_vm6, %v452_v47, %v443_v44 }
  0xae   : > { %v670_v55 = vrot.slane %v454_v45, 4 }
  0xaf   : > { %v378_v50 = vpop.permute.xlu1 %377 }
  0xb0   : > { %v387_v52 = vpop.permute.xlu0 %386 }
  0xb1   : > { %v404_v56 = vsel %vm303_vm4, %v378_v50, %v387_v52 }
  0xb3   : > { %v2122_v54 = vpop.permute.xlu1 %2121 }
  0xb4   : > { %v2124_v57 = vunpack.i.h.bf16 %v2122_v54  ;;  %v2123_v58 = vunpack.i.l.bf16 %v2122_v54  ;;  %v396_v59 = vpop.permute.xlu0 %395 }
  0xb5   : > { %v406_v60 = vsel %vm306_vm6, %v404_v56, %v396_v59 }
  0xb6   : > { %v449_v5 = vsel %vm297_vm5, %v2392_v49, %v2124_v57  ;;  %v707_v48 = vsel %vm287_vm3, %v406_v60, %v670_v55  ;;  %v400_v62 = vsel %vm297_vm5, %v2382_v46, %v2123_v58 }
  0xb7   : > { %v427_v63 = vpop.permute.xlu1 %426  ;;  %1966 = vmatprep.mubr.msk.f32.mxu0 %vm747_vm8, %v707_v48  ;;  %v402_v0 = vsel %vm300_vm7, %v400_v62, %v378_v50 }
  0xb8   : > { %v436_v2 = vpop.permute.xlu0 %435  ;;  %v706_v10 = vsel %vm287_vm3, %v402_v0, %v669_v61  ;;  %v451_v11 = vsel %vm300_vm7, %v449_v5, %v427_v63 }
  0xb9   : > { %v453_v13 = vsel %vm303_vm4, %v427_v63, %v436_v2  ;;  %865 = vmatmul.mubr.f32.gmra.mxu0 %v706_v10  ;;  %v671_v49 = vrot.slane %v451_v11, 4 }
  0xbb   : > { %v445_v14 = vpop.permute.xlu1 %444  ;;  %v672_v19 = vsel %vm287_vm3, %v669_v61, %v671_v49 }
  0xbc   : > { %v455_v15 = vsel %vm306_vm6, %v453_v13, %v445_v14  ;;  %v474_v16 = vpop.permute.xlu0 %473 }
  0xbd   : > { %v673_v17 = vrot.slane %v455_v15, 4 }
  0xbf   : > { %v483_v46 = vpop.permute.xlu1 %482  ;;  %v674_v7 = vsel %vm287_vm3, %v670_v55, %v673_v17 }
  0xc0   : > { %1967 = vmatprep.mubr.msk.f32.mxu0 %vm747_vm8, %v674_v7  ;;  %v2127_v18 = vpop.permute.xlu0 %2126  ;;  %v501_v21 = vsel %vm303_vm4, %v474_v16, %v483_v46 }
  0xc1   : > { %v2128_v20 = vunpack.i.l.bf16 %v2127_v18  ;;  %870 = vmatmul.mubr.f32.gmra.mxu0 %v672_v19  ;;  %v2129_v27 = vunpack.i.h.bf16 %v2127_v18 }
  0xc3   : > { %v492_v22 = vpop.permute.xlu1 %491  ;;  %v497_v23 = vsel %vm297_vm5, %v2499_v30, %v2128_v20  ;;  %v546_v32 = vsel %vm297_vm5, %v2509_v33, %v2129_v27 }
  0xc4   : > { %v503_v24 = vsel %vm306_vm6, %v501_v21, %v492_v22  ;;  %v523_v12 = vpop.permute.xlu0 %522  ;;  %v499_v25 = vsel %vm300_vm7, %v497_v23, %v474_v16 }
  0xc5   : > { %1968 = vmatprep.mubr.msk.f32.mxu0 %vm747_vm8, %v503_v24  ;;  %v548_v36 = vsel %vm300_vm7, %v546_v32, %v523_v12 }
  0xc6   : > { %875 = vmatmul.mubr.f32.gmra.mxu0 %v499_v25  ;;  %v682_v44 = vrot.slane %v548_v36, 4 }
  0xc7   : > { %v532_v26 = vpop.permute.xlu1 %531 }
  0xc8   : > { %v541_v6 = vpop.permute.xlu0 %540  ;;  %v550_v28 = vsel %vm303_vm4, %v523_v12, %v532_v26 }
  0xc9   : > { %v552_v30 = vsel %vm306_vm6, %v550_v28, %v541_v6 }
  0xca   : > { %v683_v38 = vrot.slane %v552_v30, 4 }
  0xcb   : > { %v476_v29 = vpop.permute.xlu1 %475 }
  0xcc   : > { %v485_v35 = vpop.permute.xlu0 %484 }
  0xcd   : > { %v502_v39 = vsel %vm303_vm4, %v476_v29, %v485_v35 }
  0xcf   : > { %v2132_v37 = vpop.permute.xlu1 %2131 }
  0xd0   : > { %v2134_v40 = vunpack.i.h.bf16 %v2132_v37  ;;  %v2133_v41 = vunpack.i.l.bf16 %v2132_v37  ;;  %v494_v42 = vpop.permute.xlu0 %493 }
  0xd1   : > { %v504_v43 = vsel %vm306_vm6, %v502_v39, %v494_v42  ;;  %v2723_v39 = vld [vmem:[%s3273_s2] ss:$0 sm:$0xff]  ;;  %v2729_v42 = vld [vmem:[%s3273_s2 + $0x1] ss:$0 sm:$0xff] }
  0xd2   : > { %v547_v47 = vsel %vm297_vm5, %v2512_v34, %v2134_v40  ;;  %v709_v33 = vsel %vm287_vm3, %v504_v43, %v683_v38  ;;  %v498_v50 = vsel %vm297_vm5, %v2502_v31, %v2133_v41 }
  0xd3   : > { %v525_v51 = vpop.permute.xlu1 %524  ;;  %1969 = vmatprep.mubr.msk.f32.mxu0 %vm747_vm8, %v709_v33  ;;  %v500_v52 = vsel %vm300_vm7, %v498_v50, %v476_v29 }
  0xd4   : > { %v534_v45 = vpop.permute.xlu0 %533  ;;  %v708_v53 = vsel %vm287_vm3, %v500_v52, %v682_v44  ;;  %v549_v54 = vsel %vm300_vm7, %v547_v47, %v525_v51  ;;  %v2734_v47 = vld [vmem:[%s3273_s2 + $0x2] ss:$0 sm:$0xff] }
  0xd5   : > { %v551_v55 = vsel %vm303_vm4, %v525_v51, %v534_v45  ;;  %880 = vmatmul.mubr.f32.gmra.mxu0 %v708_v53  ;;  %v684_v34 = vrot.slane %v549_v54, 4 }
  0xd7   : > { %v543_v56 = vpop.permute.xlu1 %542  ;;  %v685_v5 = vsel %vm287_vm3, %v682_v44, %v684_v34 }
  0xd8   : > { %v553_v57 = vsel %vm306_vm6, %v551_v55, %v543_v56  ;;  %v572_v58 = vpop.permute.xlu0 %571 }
  0xd9   : > { %v686_v59 = vrot.slane %v553_v57, 4 }
  0xdb   : > { %v581_v31 = vpop.permute.xlu1 %580  ;;  %v687_v60 = vsel %vm287_vm3, %v683_v38, %v686_v59 }
  0xdc   : > { %1970 = vmatprep.mubr.msk.f32.mxu0 %vm747_vm8, %v687_v60  ;;  %v2137_v61 = vpop.permute.xlu0 %2136  ;;  %v599_v62 = vsel %vm303_vm4, %v572_v58, %v581_v31 }
  0xdd   : > { %v2138_v48 = vunpack.i.l.bf16 %v2137_v61  ;;  %885 = vmatmul.mubr.f32.gmra.mxu0 %v685_v5  ;;  %v2139_v14 = vunpack.i.h.bf16 %v2137_v61 }
  0xdf   : > { %v590_v63 = vpop.permute.xlu1 %589  ;;  %v595_v0 = vsel %vm297_vm5, %v2558_v3, %v2138_v48  ;;  %v644_v17 = vsel %vm297_vm5, %v2564_v8, %v2139_v14 }
  0xe0   : > { %v601_v2 = vsel %vm306_vm6, %v599_v62, %v590_v63  ;;  %v621_v10 = vpop.permute.xlu0 %620  ;;  %v597_v11 = vsel %vm300_vm7, %v595_v0, %v572_v58 }
  0xe1   : > { %1971 = vmatprep.mubr.msk.f32.mxu0 %vm747_vm8, %v601_v2  ;;  %v646_v7 = vsel %vm300_vm7, %v644_v17, %v621_v10 }
  0xe2   : > { %890 = vmatmul.mubr.f32.gmra.mxu0 %v597_v11  ;;  %v695_v12 = vrot.slane %v646_v7, 4 }
  0xe3   : > { %v630_v13 = vpop.permute.xlu1 %629 }
  0xe4   : > { %v639_v49 = vpop.permute.xlu0 %638  ;;  %v648_v15 = vsel %vm303_vm4, %v621_v10, %v630_v13 }
  0xe5   : > { %v650_v3 = vsel %vm306_vm6, %v648_v15, %v639_v49 }
  0xe6   : > { %v696_v19 = vrot.slane %v650_v3, 4 }
  0xe7   : > { %v574_v16 = vpop.permute.xlu1 %573 }
  0xe8   : > { %v583_v46 = vpop.permute.xlu0 %582 }
  0xe9   : > { %v600_v20 = vsel %vm303_vm4, %v574_v16, %v583_v46 }
  0xeb   : > { %v2142_v18 = vpop.permute.xlu1 %2141 }
  0xec   : > { %v2144_v21 = vunpack.i.h.bf16 %v2142_v18  ;;  %v2143_v22 = vunpack.i.l.bf16 %v2142_v18  ;;  %v592_v23 = vpop.permute.xlu0 %591 }
  0xed   : > { %v602_v24 = vsel %vm306_vm6, %v600_v20, %v592_v23 }
  0xee   : > { %v645_v25 = vsel %vm297_vm5, %v2567_v9, %v2144_v21  ;;  %v711_v8 = vsel %vm287_vm3, %v602_v24, %v696_v19  ;;  %v596_v26 = vsel %vm297_vm5, %v2561_v4, %v2143_v22 }
  0xef   : > { %v623_v27 = vpop.permute.xlu1 %622  ;;  %1972 = vmatprep.mubr.msk.f32.mxu0 %vm747_vm8, %v711_v8  ;;  %v598_v6 = vsel %vm300_vm7, %v596_v26, %v574_v16 }
  0xf0   : > { %v632_v28 = vpop.permute.xlu0 %631  ;;  %v710_v29 = vsel %vm287_vm3, %v598_v6, %v695_v12  ;;  %v647_v32 = vsel %vm300_vm7, %v645_v25, %v623_v27 }
  0xf1   : > { %v649_v35 = vsel %vm303_vm4, %v623_v27, %v632_v28  ;;  %895 = vmatmul.mubr.f32.gmra.mxu0 %v710_v29  ;;  %v697_v9 = vrot.slane %v647_v32, 4 }
  0xf3   : > { %v641_v30 = vpop.permute.xlu1 %640  ;;  %v698_v38 = vsel %vm287_vm3, %v695_v12, %v697_v9 }
  0xf4   : > { %v651_v36 = vsel %vm306_vm6, %v649_v35, %v641_v30 }
  0xf5   : > { %v699_v37 = vrot.slane %v651_v36, 4 }
  0xf7   : > { %v700_v4 = vsel %vm287_vm3, %v696_v19, %v699_v37 }
  0xf8   : > { %1973 = vmatprep.mubr.msk.f32.mxu0 %vm747_vm8, %v700_v4 }
  0xf9   : > { %900 = vmatmul.mubr.f32.gmra.mxu0 %v698_v38 }
 0x14e   : > { %v846_v40 = vpop.f32.mrf.mxu0 }
 0x14f   : > { %v847_v41 = vadd.f32 %v2723_v39, %v846_v40 }
 0x150   : > { %v848_v43 = vpop.f32.mrf.mxu0 }
 0x151   : > { %v905_v44 = vmax.f32 %v847_v41, 0.0 }
 0x153   : > { %v922_v33 = vmul.f32 %v2729_v42, %v905_v44 }
 0x155   : > { %v2738_v50 = vadd.f32 %v2734_v47, %v922_v33 }
 0x157   : > { %963 = vrot.lane.b32.xlu0 %v2738_v50, %s2208_s20 }
 0x15b   : > { %999 = vrot.lane.b32.xlu0 %v2738_v50, %s2209_s23 }
 0x15d   : > { %v851_v51 = vpop.f32.mrf.mxu0 }
 0x15e   : > { %v852_v52 = vadd.f32 %v2723_v39, %v851_v51 }
 0x15f   : > { %v853_v45 = vpop.f32.mrf.mxu0 }
 0x160   : > { %v906_v53 = vmax.f32 %v852_v52, 0.0 }
 0x162   : > { %v923_v54 = vmul.f32 %v2729_v42, %v906_v53 }
 0x164   : > { %v2747_v55 = vadd.f32 %v2734_v47, %v923_v54 }
 0x165   : > { %v856_v56 = vpop.f32.mrf.mxu0 }
 0x166   : > { %v857_v34 = vadd.f32 %v2723_v39, %v856_v56  ;;  %965 = vrot.lane.b32.xlu1 %v2747_v55, %s2208_s20 }
 0x167   : > { %v858_v57 = vpop.f32.mrf.mxu0 }
 0x168   : > { %v907_v58 = vmax.f32 %v857_v34, 0.0 }
 0x16a   : > { %v924_v59 = vmul.f32 %v2729_v42, %v907_v58  ;;  %v861_v31 = vpop.f32.mrf.mxu0  ;;  %1001 = vrot.lane.b32.xlu1 %v2747_v55, %s2209_s23 }
 0x16b   : > { %v862_v60 = vadd.f32 %v2723_v39, %v861_v31 }
 0x16c   : > { %v863_v61 = vpop.f32.mrf.mxu0  ;;  %v2757_v5 = vadd.f32 %v2734_v47, %v924_v59 }
 0x16d   : > { %v908_v48 = vmax.f32 %v862_v60, 0.0 }
 0x16e   : > { %967 = vrot.lane.b32.xlu0 %v2757_v5, %s2208_s20 }
 0x16f   : > { %v925_v62 = vmul.f32 %v2729_v42, %v908_v48 }
 0x171   : > { %v2763_v63 = vadd.f32 %v2734_v47, %v925_v62 }
 0x172   : > { %1003 = vrot.lane.b32.xlu0 %v2757_v5, %s2209_s23 }
 0x173   : > { %969 = vrot.lane.b32.xlu1 %v2763_v63, %s2208_s20 }
 0x177   : > { %1005 = vrot.lane.b32.xlu1 %v2763_v63, %s2209_s23 }
 0x179   : > { %v866_v0 = vpop.f32.mrf.mxu0 }
 0x17a   : > { %v867_v2 = vadd.f32 %v2723_v39, %v866_v0 }
 0x17b   : > { %v868_v10 = vpop.f32.mrf.mxu0 }
 0x17c   : > { %v909_v11 = vmax.f32 %v867_v2, 0.0 }
 0x17e   : > { %v926_v13 = vmul.f32 %v2729_v42, %v909_v11 }
 0x180   : > { %v2774_v14 = vadd.f32 %v2734_v47, %v926_v13 }
 0x181   : > { %v871_v49 = vpop.f32.mrf.mxu0 }
 0x182   : > { %v872_v15 = vadd.f32 %v2723_v39, %v871_v49  ;;  %1007 = vrot.lane.b32.xlu1 %v2774_v14, %s2209_s23  ;;  %971 = vrot.lane.b32.xlu0 %v2774_v14, %s2208_s20 }
 0x183   : > { %v873_v16 = vpop.f32.mrf.mxu0 }
 0x184   : > { %v910_v17 = vmax.f32 %v872_v15, 0.0 }
 0x186   : > { %v927_v46 = vmul.f32 %v2729_v42, %v910_v17  ;;  %v876_v3 = vpop.f32.mrf.mxu0 }
 0x187   : > { %v877_v7 = vadd.f32 %v2723_v39, %v876_v3 }
 0x188   : > { %v878_v18 = vpop.f32.mrf.mxu0  ;;  %v2784_v19 = vadd.f32 %v2734_v47, %v927_v46 }
 0x189   : > { %v911_v20 = vmax.f32 %v877_v7, 0.0 }
 0x18a   : > { %973 = vrot.lane.b32.xlu0 %v2784_v19, %s2208_s20 }
 0x18b   : > { %v928_v21 = vmul.f32 %v2729_v42, %v911_v20 }
 0x18d   : > { %v2790_v22 = vadd.f32 %v2734_v47, %v928_v21 }
 0x18e   : > { %1009 = vrot.lane.b32.xlu0 %v2784_v19, %s2209_s23 }
 0x18f   : > { %975 = vrot.lane.b32.xlu1 %v2790_v22, %s2208_s20 }
 0x193   : > { %1011 = vrot.lane.b32.xlu1 %v2790_v22, %s2209_s23 }
 0x195   : > { %v881_v23 = vpop.f32.mrf.mxu0 }
 0x196   : > { %v882_v24 = vadd.f32 %v2723_v39, %v881_v23  ;;  %v1534_v23 = vld [vmem:[%s3274_s3 + $0xf8] sm:$0xff] }
 0x197   : > { %v883_v12 = vpop.f32.mrf.mxu0  ;;  %1985 = vmatprep.subr.mxu1 %v1534_v23  ;;  %v1506_v23 = vld [vmem:[%s3274_s3 + $0x18] sm:$0xff] }
 0x198   : > { %v912_v25 = vmax.f32 %v882_v24, 0.0  ;;  %v1533_v12 = vld [vmem:[%s3274_s3 + $0xf0] sm:$0xff] }
 0x19a   : > { %v929_v8 = vmul.f32 %v2729_v42, %v912_v25  ;;  %v1517_v25 = vld [vmem:[%s3274_s3 + $0x70] sm:$0xff] }
 0x19c   : > { %v2801_v26 = vadd.f32 %v2734_v47, %v929_v8 }
 0x19d   : > { %v886_v27 = vpop.f32.mrf.mxu0 }
 0x19e   : > { %v887_v6 = vadd.f32 %v2723_v39, %v886_v27  ;;  %1013 = vrot.lane.b32.xlu1 %v2801_v26, %s2209_s23  ;;  %977 = vrot.lane.b32.xlu0 %v2801_v26, %s2208_s20 }
 0x19f   : > { %v888_v28 = vpop.f32.mrf.mxu0 }
 0x1a0   : > { %v913_v29 = vmax.f32 %v887_v6, 0.0  ;;  %v1532_v28 = vld [vmem:[%s3274_s3 + $0xe8] sm:$0xff] }
 0x1a2   : > { %v930_v32 = vmul.f32 %v2729_v42, %v913_v29  ;;  %v891_v35 = vpop.f32.mrf.mxu0 }
 0x1a3   : > { %v892_v30 = vadd.f32 %v2723_v39, %v891_v35 }
 0x1a4   : > { %v893_v9 = vpop.f32.mrf.mxu0  ;;  %v2811_v36 = vadd.f32 %v2734_v47, %v930_v32 }
 0x1a5   : > { %v914_v37 = vmax.f32 %v892_v30, 0.0  ;;  %v1516_v30 = vld [vmem:[%s3274_s3 + $0x68] sm:$0xff] }
 0x1a6   : > { %979 = vrot.lane.b32.xlu0 %v2811_v36, %s2208_s20 }
 0x1a7   : > { %v931_v4 = vmul.f32 %v2729_v42, %v914_v37  ;;  %v1531_v37 = vld [vmem:[%s3274_s3 + $0xe0] sm:$0xff] }
 0x1a9   : > { %v2817_v38 = vadd.f32 %v2734_v47, %v931_v4 }
 0x1aa   : > { %1015 = vrot.lane.b32.xlu0 %v2811_v36, %s2209_s23 }
 0x1ab   : > { %981 = vrot.lane.b32.xlu1 %v2817_v38, %s2208_s20 }
 0x1af   : > { %1017 = vrot.lane.b32.xlu1 %v2817_v38, %s2209_s23 }
 0x1b1   : > { %v896_v40 = vpop.f32.mrf.mxu0 }
 0x1b2   : > { %v897_v41 = vadd.f32 %v2723_v39, %v896_v40  ;;  %v1515_v40 = vld [vmem:[%s3274_s3 + $0x60] sm:$0xff] }
 0x1b3   : > { %v898_v43 = vpop.f32.mrf.mxu0 }
 0x1b4   : > { %v915_v44 = vmax.f32 %v897_v41, 0.0  ;;  %v1530_v41 = vld [vmem:[%s3274_s3 + $0xd8] sm:$0xff] }
 0x1b6   : > { %v932_v33 = vmul.f32 %v2729_v42, %v915_v44 }
 0x1b8   : > { %v2828_v51 = vadd.f32 %v2734_v47, %v932_v33  ;;  %v1514_v33 = vld [vmem:[%s3274_s3 + $0x58] sm:$0xff] }
 0x1b9   : > { %v901_v52 = vpop.f32.mrf.mxu0 }
 0x1ba   : > { %v902_v45 = vadd.f32 %v2723_v39, %v901_v52  ;;  %1019 = vrot.lane.b32.xlu1 %v2828_v51, %s2209_s23  ;;  %983 = vrot.lane.b32.xlu0 %v2828_v51, %s2208_s20  ;;  %v1513_v52 = vld [vmem:[%s3274_s3 + $0x50] sm:$0xff] }
 0x1bb   : > { %v903_v53 = vpop.f32.mrf.mxu0 }
 0x1bc   : > { %v916_v54 = vmax.f32 %v902_v45, 0.0  ;;  %v1528_v45 = vld [vmem:[%s3274_s3 + $0xc8] sm:$0xff] }
 0x1be   : > { %v933_v56 = vmul.f32 %v2729_v42, %v916_v54  ;;  %v1512_v54 = vld [vmem:[%s3274_s3 + $0x48] sm:$0xff] }
 0x1c0   : > { %v2837_v34 = vadd.f32 %v2734_v47, %v933_v56 }
 0x1c2   : > { %1021 = vrot.lane.b32.xlu1 %v2837_v34, %s2209_s23  ;;  %985 = vrot.lane.b32.xlu0 %v2837_v34, %s2208_s20 }
 0x1c9   : > { %v964_v39 = vpop.permute.xlu0 %963 }
 0x1cd   : > { %v1000_v57 = vpop.permute.xlu0 %999 }
 0x1ce   : > { %v1036_v59 = vsel %vm1035_vm9, %v964_v39, %v1000_v57 }
 0x1cf   : > { %v1048_v31 = vmax.f32 %v2738_v50, %v1036_v59 }
 0x1d1   : > { %v1072_v61 = vrot.slane %v1048_v31, 1 }
 0x1d8   : > { %v966_v58 = vpop.permute.xlu1 %965 }
 0x1dc   : > { %v1002_v60 = vpop.permute.xlu1 %1001 }
 0x1dd   : > { %v1037_v42 = vsel %vm1035_vm9, %v966_v58, %v1002_v60  ;;  %v1511_v60 = vld [vmem:[%s3274_s3 + $0x40] sm:$0xff] }
 0x1de   : > { %v1049_v47 = vmax.f32 %v2747_v55, %v1037_v42  ;;  %v1526_v42 = vld [vmem:[%s3274_s3 + $0xb8] sm:$0xff] }
 0x1e0   : > { %v1073_v48 = vrot.slane %v1049_v47, 1  ;;  %v968_v62 = vpop.permute.xlu0 %967 }
 0x1e2   : > { %v1074_v0 = vsel %vm257_vm1, %v1072_v61, %v1073_v48 }
 0x1e3   : > { %v2848_v2 = vmax.f32 %v1048_v31, %v1074_v0  ;;  %v1527_v31 = vld [vmem:[%s3274_s3 + $0xc0] sm:$0xff]  ;;  %v1509_v0 = vld [vmem:[%s3274_s3 + $0x30] sm:$0xff] }
 0x1e4   : > { %v1004_v10 = vpop.permute.xlu0 %1003 }
 0x1e5   : > { %v1038_v11 = vsel %vm1035_vm9, %v968_v62, %v1004_v10  ;;  %v970_v13 = vpop.permute.xlu1 %969  ;;  %v1128_v49 = vrot.slane %v2848_v2, 6  ;;  %v1124_v8 = vrot.slane %v2848_v2, 4 }
 0x1e6   : > { %v1050_v50 = vmax.f32 %v2757_v5, %v1038_v11  ;;  %v1120_v5 = vrot.slane %v2848_v2, 2 }
 0x1e7   : > { %1129 = vrot.lane.b32.xlu1 %v1128_v49, %s2210_s25 }
 0x1e8   : > { %v1075_v15 = vrot.slane %v1050_v50, 1 }
 0x1e9   : > { %v1006_v55 = vpop.permute.xlu1 %1005 }
 0x1ea   : > { %v1076_v16 = vsel %vm257_vm1, %v1073_v48, %v1075_v15  ;;  %v1039_v17 = vsel %vm1035_vm9, %v970_v13, %v1006_v55  ;;  %v1525_v48 = vld [vmem:[%s3274_s3 + $0xb0] sm:$0xff]  ;;  %v1524_v13 = vld [vmem:[%s3274_s3 + $0xa8] sm:$0xff] }
 0x1eb   : > { %v2856_v46 = vmax.f32 %v1049_v47, %v1076_v16  ;;  %v1051_v3 = vmax.f32 %v2763_v63, %v1039_v17  ;;  %v1518_v63 = vld [vmem:[%s3274_s3 + $0x78] sm:$0xff]  ;;  %v1523_v16 = vld [vmem:[%s3274_s3 + $0xa0] sm:$0xff] }
 0x1ec   : > { %1986 = vmatpush3.msra.mxu1 %v1518_v63  ;;  %v1510_v47 = vld [vmem:[%s3274_s3 + $0x38] sm:$0xff]  ;;  %v1520_v63 = vld [vmem:[%s3274_s3 + $0x88] sm:$0xff] }
 0x1ed   : > { %v1077_v7 = vrot.slane %v1051_v3, 1  ;;  %1133 = vrot.lane.b32.xlu1 %v2856_v46, %s2211_s26  ;;  %v1149_v18 = vrot.slane %v2856_v46, 2  ;;  %1987 = vmatprep.subr.mxu1 %v1533_v12  ;;  %v1143_v6 = vrot.slane %v2856_v46, 6 }
 0x1ee   : > { %1988 = vmatpush3.msra.mxu1 %v1517_v25  ;;  %v1504_v25 = vld [vmem:[%s3274_s3 + $0x8] sm:$0xff] }
 0x1ef   : > { %v1078_v20 = vsel %vm257_vm1, %v1075_v15, %v1077_v7  ;;  %v2145_v21 = vpack.i.bf16 %v1149_v18, %v1120_v5  ;;  %1989 = vmatprep.subr.mxu1 %v1532_v28  ;;  %v1508_v15 = vld [vmem:[%s3274_s3 + $0x28] sm:$0xff]  ;;  %v1522_v18 = vld [vmem:[%s3274_s3 + $0x98] sm:$0xff] }
 0x1f0   : > { %v1109_v24 = vmax.f32 %v1050_v50, %v1078_v20  ;;  %1990 = vmatpush3.msra.mxu1 %v1516_v30 }
 0x1f1   : > { %2146 = vrot.lane.b32.xlu0 %v2145_v21, %s2212_s8  ;;  %1991 = vmatprep.subr.mxu1 %v1531_v37 }
 0x1f2   : > { %v1154_v27 = vrot.slane %v1109_v24, 4  ;;  %1992 = vmatpush3.msra.mxu1 %v1515_v40  ;;  %v1158_v44 = vrot.slane %v1109_v24, 6  ;;  %v1169_v58 = vrot.slane %v1109_v24, 2 }
 0x1f3   : > { %1993 = vmatprep.subr.mxu1 %v1530_v41 }
 0x1f4   : > { %v1008_v29 = vpop.permute.xlu1 %1007  ;;  %v972_v32 = vpop.permute.xlu0 %971  ;;  %v2150_v35 = vpack.i.bf16 %v1154_v27, %v1124_v8  ;;  %1994 = vmatpush3.msra.mxu1 %v1514_v33  ;;  %v1519_v27 = vld [vmem:[%s3274_s3 + $0x80] sm:$0xff] }
 0x1f5   : > { %v1040_v9 = vsel %vm1035_vm9, %v972_v32, %v1008_v29  ;;  %1144 = vrot.lane.b32.xlu0 %v1143_v6, %s2210_s25  ;;  %v1503_v6 = vld [vmem:[%s3274_s3] sm:$0xff] }
 0x1f6   : > { %v1052_v4 = vmax.f32 %v2774_v14, %v1040_v9  ;;  %2151 = vrot.lane.b32.xlu1 %v2150_v35, %s2206_s24  ;;  %v1529_v14 = vld [vmem:[%s3274_s3 + $0xd0] sm:$0xff] }
 0x1f7   : > { %1995 = vmatprep.subr.mxu1 %v1529_v14 }
 0x1f8   : > { %v1079_v43 = vrot.slane %v1052_v4, 1  ;;  %1996 = vmatpush3.msra.mxu1 %v1513_v52 }
 0x1f9   : > { %1162 = vrot.lane.b32.xlu0 %v1109_v24, %s2211_s26  ;;  %1997 = vmatprep.subr.mxu1 %v1528_v45  ;;  %v1521_v24 = vld [vmem:[%s3274_s3 + $0x90] sm:$0xff] }
 0x1fa   : > { %v1080_v53 = vsel %vm257_vm1, %v1077_v7, %v1079_v43  ;;  %1159 = vrot.lane.b32.xlu1 %v1158_v44, %s2210_s25  ;;  %1998 = vmatpush3.msra.mxu1 %v1512_v54 }
 0x1fb   : > { %v2916_v56 = vmax.f32 %v1051_v3, %v1080_v53  ;;  %1999 = vmatprep.subr.mxu1 %v1527_v31 }
 0x1fc   : > { %v974_v39 = vpop.permute.xlu0 %973  ;;  %2000 = vmatpush3.msra.mxu1 %v1511_v60 }
 0x1fd   : > { %v1185_v57 = vrot.slane %v2916_v56, 6  ;;  %v1177_v59 = vrot.slane %v2916_v56, 2  ;;  %2001 = vmatprep.subr.mxu1 %v1526_v42  ;;  %v1181_v32 = vrot.slane %v2916_v56, 4 }
 0x1fe   : > { %2002 = vmatpush3.msra.mxu1 %v1510_v47 }
 0x1ff   : > { %1186 = vrot.lane.b32.xlu1 %v1185_v57, %s2210_s25  ;;  %v2155_v61 = vpack.i.bf16 %v1177_v59, %v1169_v58  ;;  %2003 = vmatprep.subr.mxu1 %v1525_v48 }
 0x200   : > { %v1010_v62 = vpop.permute.xlu0 %1009  ;;  %2004 = vmatpush3.msra.mxu1 %v1509_v0 }
 0x201   : > { %v1041_v10 = vsel %vm1035_vm9, %v974_v39, %v1010_v62  ;;  %v976_v11 = vpop.permute.xlu1 %975  ;;  %2156 = vrot.lane.b32.xlu0 %v2155_v61, %s2212_s8  ;;  %2005 = vmatprep.subr.mxu1 %v1524_v13 }
 0x202   : > { %v1053_v49 = vmax.f32 %v2784_v19, %v1041_v10  ;;  %2006 = vmatpush3.msra.mxu1 %v1508_v15  ;;  %v1507_v19 = vld [vmem:[%s3274_s3 + $0x20] sm:$0xff] }
 0x203   : > { %2007 = vmatprep.subr.mxu1 %v1523_v16  ;;  %v3019_v10 = vld [vmem:[%s3274_s3 + $0x160] sm:$0xff] }
 0x204   : > { %v1081_v50 = vrot.slane %v1053_v49, 1  ;;  %2008 = vmatpush3.msra.mxu1 %v1507_v19 }
 0x205   : > { %v1012_v55 = vpop.permute.xlu1 %1011  ;;  %2009 = vmatprep.subr.mxu1 %v1522_v18 }
 0x206   : > { %v1082_v17 = vsel %vm257_vm1, %v1079_v43, %v1081_v50  ;;  %v1042_v3 = vsel %vm1035_vm9, %v976_v11, %v1012_v55  ;;  %2010 = vmatpush3.msra.mxu1 %v1506_v23 }
 0x207   : > { %v2956_v7 = vmax.f32 %v1052_v4, %v1082_v17  ;;  %v1054_v5 = vmax.f32 %v2790_v22, %v1042_v3  ;;  %v1505_v22 = vld [vmem:[%s3274_s3 + $0x10] sm:$0xff]  ;;  %2011 = vmatprep.subr.mxu1 %v1521_v24 }
 0x208   : > { %2012 = vmatpush3.msra.mxu1 %v1505_v22 }
 0x209   : > { %v1083_v20 = vrot.slane %v1054_v5, 1  ;;  %v1197_v21 = vrot.slane %v2956_v7, 6  ;;  %2013 = vmatprep.subr.mxu1 %v1520_v63  ;;  %v1203_v28 = vrot.slane %v2956_v7, 2 }
 0x20a   : > { %2014 = vmatpush3.msra.mxu1 %v1504_v25 }
 0x20b   : > { %v1084_v12 = vsel %vm257_vm1, %v1081_v50, %v1083_v20  ;;  %1198 = vrot.lane.b32.xlu0 %v1197_v21, %s2210_s25  ;;  %2015 = vmatprep.subr.mxu1 %v1519_v27 }
 0x20c   : > { %v2980_v8 = vmax.f32 %v1053_v49, %v1084_v12  ;;  %2016 = vmatpush3.msra.mxu1 %v1503_v6 }
 0x20d   : > { %2043 = vmatprep.subr.mxu1 %v3019_v10 }
 0x20e   : > { %v1223_v29 = vrot.slane %v2980_v8, 2  ;;  %v1208_v35 = vrot.slane %v2980_v8, 4  ;;  %v1212_v44 = vrot.slane %v2980_v8, 6 }
 0x210   : > { %v1014_v30 = vpop.permute.xlu1 %1013  ;;  %v978_v9 = vpop.permute.xlu0 %977  ;;  %v2165_v37 = vpack.i.bf16 %v1223_v29, %v1203_v28  ;;  %v2160_v4 = vpack.i.bf16 %v1208_v35, %v1181_v32 }
 0x211   : > { %v1043_v40 = vsel %vm1035_vm9, %v978_v9, %v1014_v30 }
 0x212   : > { %v1055_v41 = vmax.f32 %v2801_v26, %v1043_v40  ;;  %2166 = vrot.lane.b32.xlu1 %v2165_v37, %s2212_s8  ;;  %2161 = vrot.lane.b32.xlu0 %v2160_v4, %s2206_s24 }
 0x214   : > { %v1085_v43 = vrot.slane %v1055_v41, 1 }
 0x216   : > { %v1086_v33 = vsel %vm257_vm1, %v1083_v20, %v1085_v43  ;;  %1213 = vrot.lane.b32.xlu0 %v1212_v44, %s2210_s25 }
 0x217   : > { %v2999_v14 = vmax.f32 %v1054_v5, %v1086_v33 }
 0x218   : > { %v980_v52 = vpop.permute.xlu0 %979 }
 0x219   : > { %v1239_v45 = vrot.slane %v2999_v14, 6  ;;  %v1231_v61 = vrot.slane %v2999_v14, 2 }
 0x21b   : > { %1240 = vrot.lane.b32.xlu0 %v1239_v45, %s2210_s25 }
 0x21c   : > { %v1016_v53 = vpop.permute.xlu0 %1015 }
 0x21d   : > { %v1044_v26 = vsel %vm1035_vm9, %v980_v52, %v1016_v53  ;;  %v982_v54 = vpop.permute.xlu1 %981 }
 0x21e   : > { %v1056_v39 = vmax.f32 %v2811_v36, %v1044_v26 }
 0x220   : > { %v1087_v57 = vrot.slane %v1056_v39, 1 }
 0x221   : > { %v1018_v58 = vpop.permute.xlu1 %1017 }
 0x222   : > { %v1088_v59 = vsel %vm257_vm1, %v1085_v43, %v1087_v57  ;;  %v1045_v31 = vsel %vm1035_vm9, %v982_v54, %v1018_v58 }
 0x223   : > { %v3007_v60 = vmax.f32 %v1055_v41, %v1088_v59  ;;  %v1057_v42 = vmax.f32 %v2817_v38, %v1045_v31  ;;  %v1235_v38 = vrot.slane %v2999_v14, 4 }
 0x225   : > { %v1089_v47 = vrot.slane %v1057_v42, 1  ;;  %1244 = vrot.lane.b32.xlu1 %v3007_v60, %s2211_s26  ;;  %v1257_v48 = vrot.slane %v3007_v60, 2  ;;  %v1251_v13 = vrot.slane %v3007_v60, 6 }
 0x227   : > { %v1090_v36 = vsel %vm257_vm1, %v1087_v57, %v1089_v47  ;;  %v2170_v62 = vpack.i.bf16 %v1257_v48, %v1231_v61 }
 0x228   : > { %v1115_v0 = vmax.f32 %v1056_v39, %v1090_v36 }
 0x229   : > { %2171 = vrot.lane.b32.xlu1 %v2170_v62, %s2212_s8 }
 0x22a   : > { %v1262_v11 = vrot.slane %v1115_v0, 4  ;;  %v1266_v3 = vrot.slane %v1115_v0, 6  ;;  %v1277_v24 = vrot.slane %v1115_v0, 2 }
 0x22c   : > { %v1020_v49 = vpop.permute.xlu1 %1019  ;;  %v984_v50 = vpop.permute.xlu0 %983  ;;  %v2175_v15 = vpack.i.bf16 %v1262_v11, %v1235_v38 }
 0x22d   : > { %v1046_v55 = vsel %vm1035_vm9, %v984_v50, %v1020_v49  ;;  %1252 = vrot.lane.b32.xlu1 %v1251_v13, %s2210_s25 }
 0x22e   : > { %v1058_v16 = vmax.f32 %v2828_v51, %v1046_v55  ;;  %2176 = vrot.lane.b32.xlu0 %v2175_v15, %s2206_s24 }
 0x230   : > { %v1091_v17 = vrot.slane %v1058_v16, 1 }
 0x231   : > { %1270 = vrot.lane.b32.xlu1 %v1115_v0, %s2211_s26 }
 0x232   : > { %v1092_v19 = vsel %vm257_vm1, %v1089_v47, %v1091_v17  ;;  %1267 = vrot.lane.b32.xlu0 %v1266_v3, %s2210_s25 }
 0x233   : > { %v3031_v5 = vmax.f32 %v1057_v42, %v1092_v19 }
 0x234   : > { %v1022_v18 = vpop.permute.xlu1 %1021  ;;  %v986_v20 = vpop.permute.xlu0 %985 }
 0x235   : > { %v1047_v21 = vsel %vm1035_vm9, %v986_v20, %v1022_v18  ;;  %v1293_v23 = vrot.slane %v3031_v5, 6  ;;  %v1285_v51 = vrot.slane %v3031_v5, 2  ;;  %v1289_v29 = vrot.slane %v3031_v5, 4 }
 0x236   : > { %v1059_v22 = vmax.f32 %v2837_v34, %v1047_v21  ;;  %vm1553_vm9 = vcmask 850944  }
 0x237   : > { %1294 = vrot.lane.b32.xlu0 %v1293_v23, %s2210_s25  ;;  %v2180_v63 = vpack.i.bf16 %v1285_v51, %v1277_v24 }
 0x238   : > { %v1093_v12 = vrot.slane %v1059_v22, 1 }
 0x239   : > { %2181 = vrot.lane.b32.xlu1 %v2180_v63, %s2212_s8 }
 0x23a   : > { %v1094_v25 = vsel %vm257_vm1, %v1091_v17, %v1093_v12  ;;  %v1118_v27 = vmax.f32 %v1059_v22, %v1093_v12 }
 0x23b   : > { %v3040_v6 = vmax.f32 %v1058_v16, %v1094_v25 }
 0x23c   : > { %v1320_v28 = vrot.slane %v1118_v27, 6  ;;  %v1316_v32 = vrot.slane %v1118_v27, 4  ;;  %v1331_v30 = vrot.slane %v1118_v27, 2 }
 0x23d   : > { %v1311_v34 = vrot.slane %v3040_v6, 2  ;;  %v1305_v9 = vrot.slane %v3040_v6, 6 }
 0x23e   : > { %1321 = vrot.lane.b32.xlu0 %v1320_v28, %s2210_s25  ;;  %v2185_v35 = vpack.i.bf16 %v1316_v32, %v1289_v29 }
 0x23f   : > { %v2190_v37 = vpack.i.bf16 %v1331_v30, %v1311_v34 }
 0x240   : > { %2186 = vrot.lane.b32.xlu1 %v2185_v35, %s2206_s24 }
 0x242   : > { %1306 = vrot.lane.b32.xlu0 %v1305_v9, %s2210_s25 }
 0x244   : > { %2191 = vrot.lane.b32.xlu1 %v2190_v37, %s2212_s8 }
 0x246   : > { %1190 = vrot.lane.b32.xlu0 %v2956_v7, %s2211_s26 }
 0x248   : > { %1298 = vrot.lane.b32.xlu1 %v3040_v6, %s2211_s26 }
 0x24a   : > { %1216 = vrot.lane.b32.xlu0 %v2980_v8, %s2211_s26 }
 0x24c   : > { %1324 = vrot.lane.b32.xlu1 %v1118_v27, %s2211_s26 }
 0x259   : > { %v1130_v4 = vpop.permute.xlu1 %1129 }
 0x25f   : > { %v1134_v40 = vpop.permute.xlu1 %1133 }
 0x260   : > { %v1142_v41 = vsel %vm1141_vm10, %v1130_v4, %v1134_v40 }
 0x263   : > { %v2147_v43 = vpop.permute.xlu0 %2146 }
 0x264   : > { %v2148_v31 = vunpack.i.l.bf16 %v2147_v43  ;;  %v2149_v61 = vunpack.i.h.bf16 %v2147_v43 }
 0x266   : > { %v1137_v48 = vsel %vm1136_vm14, %v2848_v2, %v2148_v31  ;;  %v1165_v11 = vsel %vm1136_vm14, %v2856_v46, %v2149_v61 }
 0x267   : > { %v1145_v44 = vpop.permute.xlu0 %1144  ;;  %v1341_v38 = vrot.slane %v1137_v48, 1  ;;  %v1350_v55 = vrot.slane %v1165_v11, 2  ;;  %v1544_v11 = vld [vmem:[%s3274_s3 + $0x148] sm:$0xff] }
 0x268   : > { %v1148_v33 = vsel %vm1141_vm10, %v1145_v44, %v1134_v40  ;;  %v2152_v52 = vpop.permute.xlu1 %2151 }
 0x269   : > { %v1343_v45 = vrot.slane %v1148_v33, 1  ;;  %v2153_v42 = vunpack.i.l.bf16 %v2152_v52  ;;  %v2154_v36 = vunpack.i.h.bf16 %v2152_v52  ;;  %v1459_v2 = vsel %vm1458_vm11, %v1137_v48, %v1341_v38  ;;  %v1545_v38 = vld [vmem:[%s3274_s3 + $0x150] sm:$0xff] }
 0x26a   : > { %v1463_v23 = vsel %vm1462_vm13, %v1459_v2, %v1350_v55  ;;  %v1540_v55 = vld [vmem:[%s3274_s3 + $0x128] sm:$0xff] }
 0x26b   : > { %v1461_v53 = vsel %vm1458_vm11, %v1142_v41, %v1343_v45  ;;  %v1163_v26 = vpop.permute.xlu0 %1162  ;;  %v1138_v0 = vsel %vm303_vm4, %v2148_v31, %v2153_v42  ;;  %v1166_v50 = vsel %vm303_vm4, %v2149_v61, %v2154_v36 }
 0x26c   : > { %v1160_v54 = vpop.permute.xlu1 %1159  ;;  %v1147_v49 = vsel %vm1139_vm15, %v1138_v0, %v1145_v44 }
 0x26d   : > { %v1168_v8 = vsel %vm1141_vm10, %v1160_v54, %v1163_v26  ;;  %v1342_v16 = vrot.slane %v1147_v49, 1  ;;  %v1167_v17 = vsel %vm1139_vm15, %v1166_v50, %v1160_v54  ;;  %v1541_v50 = vld [vmem:[%s3274_s3 + $0x130] sm:$0xff] }
 0x26e   : > { %v1352_v39 = vrot.slane %v1168_v8, 2  ;;  %v1360_v57 = vrot.slane %v1168_v8, 3  ;;  %v1351_v24 = vrot.slane %v1167_v17, 2  ;;  %v1538_v17 = vld [vmem:[%s3274_s3 + $0x118] sm:$0xff] }
 0x270   : > { %v1465_v58 = vsel %vm1462_vm13, %v1461_v53, %v1352_v39 }
 0x271   : > { %v3062_v59 = vsel %vm1466_vm12, %v1465_v58, %v1360_v57  ;;  %v3077_v18 = vpop.permute.xlu1 %1186 }
 0x273   : > { %v2157_v47 = vpop.permute.xlu0 %2156 }
 0x274   : > { %v2158_v62 = vunpack.i.l.bf16 %v2157_v47  ;;  %v2159_v13 = vunpack.i.h.bf16 %v2157_v47 }
 0x276   : > { %v1173_v15 = vsel %vm1136_vm14, %v2856_v46, %v2158_v62  ;;  %v1193_v3 = vsel %vm1136_vm14, %v2916_v56, %v2159_v13  ;;  %v1174_v20 = vsel %vm303_vm4, %v2158_v62, %v2154_v36  ;;  %v1140_v46 = vsel %vm1139_vm15, %v1138_v0, %v1130_v4  ;;  %v1546_v0 = vld [vmem:[%s3274_s3 + $0x158] sm:$0xff] }
 0x277   : > { %v1358_v19 = vrot.slane %v1173_v15, 3  ;;  %v1367_v51 = vrot.slane %v1193_v3, 4  ;;  %v1460_v22 = vsel %vm1458_vm11, %v1140_v46, %v1342_v16  ;;  %v1175_v63 = vsel %vm1139_vm15, %v1174_v20, %v1160_v54  ;;  %v1539_v16 = vld [vmem:[%s3274_s3 + $0x120] sm:$0xff]  ;;  %v1537_v20 = vld [vmem:[%s3274_s3 + $0x110] sm:$0xff] }
 0x278   : > { %v1464_v35 = vsel %vm1462_vm13, %v1460_v22, %v1351_v24  ;;  %v1375_v34 = vrot.slane %v1193_v3, 5  ;;  %v1359_v30 = vrot.slane %v1175_v63, 3  ;;  %v1535_v24 = vld [vmem:[%s3274_s3 + $0x100] sm:$0xff] }
 0x279   : > { %v1467_v12 = vsel %vm1466_vm12, %v1463_v23, %v1358_v19  ;;  %v1536_v23 = vld [vmem:[%s3274_s3 + $0x108] sm:$0xff] }
 0x27a   : > { %v1470_v9 = vsel %vm287_vm3, %v1467_v12, %v1367_v51  ;;  %v1468_v39 = vsel %vm1466_vm12, %v1464_v35, %v1359_v30 }
 0x27b   : > { %v1473_v31 = vsel %vm277_vm2, %v1470_v9, %v1375_v34 }
 0x27d   : > { %v3080_v21 = vpop.permute.xlu0 %1198 }
 0x284   : > { %v2167_v56 = vpop.permute.xlu1 %2166  ;;  %v2162_v25 = vpop.permute.xlu0 %2161 }
 0x285   : > { %v2169_v27 = vunpack.i.h.bf16 %v2167_v56  ;;  %v2168_v28 = vunpack.i.l.bf16 %v2167_v56  ;;  %v2164_v29 = vunpack.i.h.bf16 %v2162_v25  ;;  %v2163_v32 = vunpack.i.l.bf16 %v2162_v25 }
 0x287   : > { %v1227_v37 = vsel %vm1136_vm14, %v2956_v7, %v2169_v27  ;;  %v1219_v4 = vsel %vm1136_vm14, %v2956_v7, %v2168_v28  ;;  %v1194_v40 = vsel %vm303_vm4, %v2159_v13, %v2163_v32  ;;  %v1220_v41 = vsel %vm303_vm4, %v2168_v28, %v2164_v29  ;;  %v1543_v13 = vld [vmem:[%s3274_s3 + $0x140] sm:$0xff] }
 0x288   : > { %v1384_v43 = vrot.slane %v1219_v4, 6  ;;  %v1195_v44 = vsel %vm1139_vm15, %v1194_v40, %v3077_v18  ;;  %v1201_v33 = vsel %vm1139_vm15, %v1194_v40, %v3080_v21  ;;  %v3099_v52 = vpop.permute.xlu0 %1213  ;;  %v1228_v45 = vsel %vm303_vm4, %v2169_v27, %v2164_v29 }
 0x289   : > { %v1368_v53 = vrot.slane %v1195_v44, 4  ;;  %v1221_v26 = vsel %vm1139_vm15, %v1220_v41, %v3099_v52  ;;  %v1229_v7 = vsel %vm1139_vm15, %v1228_v45, %v3099_v52  ;;  %v1376_v54 = vrot.slane %v1201_v33, 5 }
 0x28a   : > { %v1385_v8 = vrot.slane %v1221_v26, 6  ;;  %v1392_v58 = vrot.slane %v1227_v37, 7  ;;  %v1393_v42 = vrot.slane %v1229_v7, 7  ;;  %v1476_v61 = vsel %vm267_vm0, %v1473_v31, %v1384_v43 }
 0x28b   : > { %v1471_v57 = vsel %vm287_vm3, %v1468_v39, %v1368_v53 }
 0x28c   : > { %v1474_v47 = vsel %vm277_vm2, %v1471_v57, %v1376_v54  ;;  %v1479_v62 = vsel %vm257_vm1, %v1476_v61, %v1392_v58 }
 0x28d   : > { %v1477_v48 = vsel %vm267_vm0, %v1474_v47, %v1385_v8  ;;  %v1241_v2 = vpop.permute.xlu0 %1240 }
 0x28e   : > { %v1480_v36 = vsel %vm257_vm1, %v1477_v48, %v1393_v42 }
 0x28f   : > { %1624 = vmatprep.mubr.f32.mxu1 %v1480_v36 }
 0x290   : > { %1625 = vmatmul.mubr.f32.vlgmr.msra.gmra.mxu1 %v1479_v62 }
 0x291   : > { %2044 = vmatpush3.msra.mxu1 %v3019_v10  ;;  %v1542_v10 = vld [vmem:[%s3274_s3 + $0x138] sm:$0xff] }
 0x292   : > { %2045 = vmatprep.subr.mxu1 %v1546_v0 }
 0x293   : > { %2046 = vmatpush3.msra.mxu1 %v1546_v0 }
 0x294   : > { %2047 = vmatprep.subr.mxu1 %v1545_v38 }
 0x295   : > { %2048 = vmatpush3.msra.mxu1 %v1545_v38 }
 0x296   : > { %2049 = vmatprep.subr.mxu1 %v1544_v11 }
 0x297   : > { %v1245_v49 = vpop.permute.xlu1 %1244  ;;  %2050 = vmatpush3.msra.mxu1 %v1544_v11 }
 0x298   : > { %2051 = vmatprep.subr.mxu1 %v1543_v13  ;;  %v1250_v53 = vsel %vm1141_vm10, %v1241_v2, %v1245_v49 }
 0x299   : > { %2052 = vmatpush3.msra.mxu1 %v1543_v13 }
 0x29a   : > { %2053 = vmatprep.subr.mxu1 %v1542_v10 }
 0x29b   : > { %v2172_v15 = vpop.permute.xlu1 %2171  ;;  %2054 = vmatpush3.msra.mxu1 %v1542_v10 }
 0x29c   : > { %2055 = vmatprep.subr.mxu1 %v1541_v50  ;;  %v2173_v51 = vunpack.i.l.bf16 %v2172_v15  ;;  %v2174_v56 = vunpack.i.h.bf16 %v2172_v15 }
 0x29d   : > { %2056 = vmatpush3.msra.mxu1 %v1541_v50 }
 0x29e   : > { %2057 = vmatprep.subr.mxu1 %v1540_v55  ;;  %v1247_v27 = vsel %vm1136_vm14, %v2999_v14, %v2173_v51  ;;  %v1273_v37 = vsel %vm1136_vm14, %v3007_v60, %v2174_v56 }
 0x29f   : > { %2058 = vmatpush3.msra.mxu1 %v1540_v55  ;;  %v1253_v19 = vpop.permute.xlu1 %1252  ;;  %v1401_v4 = vrot.slane %v1247_v27, 1  ;;  %v1410_v26 = vrot.slane %v1273_v37, 2 }
 0x2a0   : > { %v2177_v3 = vpop.permute.xlu0 %2176  ;;  %2059 = vmatprep.subr.mxu1 %v1539_v16  ;;  %v1256_v28 = vsel %vm1141_vm10, %v1253_v19, %v1245_v49 }
 0x2a1   : > { %2060 = vmatpush3.msra.mxu1 %v1539_v16  ;;  %v2178_v46 = vunpack.i.l.bf16 %v2177_v3  ;;  %v2179_v12 = vunpack.i.h.bf16 %v2177_v3  ;;  %v1403_v41 = vrot.slane %v1256_v28, 1  ;;  %v1482_v54 = vsel %vm1458_vm11, %v1247_v27, %v1401_v4 }
 0x2a2   : > { %2061 = vmatprep.subr.mxu1 %v1538_v17  ;;  %v1485_v62 = vsel %vm1462_vm13, %v1482_v54, %v1410_v26 }
 0x2a3   : > { %2062 = vmatpush3.msra.mxu1 %v1538_v17  ;;  %v1271_v63 = vpop.permute.xlu1 %1270  ;;  %v1248_v25 = vsel %vm303_vm4, %v2173_v51, %v2178_v46  ;;  %v1274_v35 = vsel %vm303_vm4, %v2174_v56, %v2179_v12 }
 0x2a4   : > { %2063 = vmatprep.subr.mxu1 %v1537_v20  ;;  %v1268_v22 = vpop.permute.xlu0 %1267  ;;  %v1255_v32 = vsel %vm1139_vm15, %v1248_v25, %v1253_v19  ;;  %v1249_v58 = vsel %vm1139_vm15, %v1248_v25, %v1241_v2 }
 0x2a5   : > { %2064 = vmatpush3.msra.mxu1 %v1537_v20  ;;  %v1276_v34 = vsel %vm1141_vm10, %v1268_v22, %v1271_v63  ;;  %v1402_v44 = vrot.slane %v1255_v32, 1  ;;  %v1275_v33 = vsel %vm1139_vm15, %v1274_v35, %v1268_v22 }
 0x2a6   : > { %2065 = vmatprep.subr.mxu1 %v1536_v23  ;;  %v1412_v45 = vrot.slane %v1276_v34, 2  ;;  %v1411_v31 = vrot.slane %v1275_v33, 2  ;;  %v1420_v42 = vrot.slane %v1276_v34, 3 }
 0x2a7   : > { %2066 = vmatpush3.msra.mxu1 %v1536_v23  ;;  %v1483_v61 = vsel %vm1458_vm11, %v1249_v58, %v1402_v44 }
 0x2a8   : > { %2067 = vmatprep.subr.mxu1 %v1535_v24  ;;  %v1486_v49 = vsel %vm1462_vm13, %v1483_v61, %v1411_v31 }
 0x2a9   : > { %2068 = vmatpush3.msra.mxu1 %v1535_v24  ;;  %v1295_v30 = vpop.permute.xlu0 %1294 }
 0x2aa   : > { %2072 = vmatprep.subr.mxu1 %v2203_v1 }
 0x2ab   : > { %v2182_v29 = vpop.permute.xlu1 %2181 }
 0x2ac   : > { %v2183_v9 = vunpack.i.l.bf16 %v2182_v29  ;;  %v2184_v40 = vunpack.i.h.bf16 %v2182_v29 }
 0x2ae   : > { %v1281_v14 = vsel %vm1136_vm14, %v3007_v60, %v2183_v9  ;;  %v1282_v43 = vsel %vm303_vm4, %v2183_v9, %v2179_v12  ;;  %v1301_v8 = vsel %vm1136_vm14, %v3031_v5, %v2184_v40  ;;  %v1484_v60 = vsel %vm1458_vm11, %v1250_v53, %v1403_v41 }
 0x2af   : > { %v1283_v39 = vsel %vm1139_vm15, %v1282_v43, %v1268_v22  ;;  %v1418_v57 = vrot.slane %v1281_v14, 3  ;;  %v1487_v48 = vsel %vm1462_vm13, %v1484_v60, %v1412_v45  ;;  %v1427_v0 = vrot.slane %v1301_v8, 4 }
 0x2b0   : > { %v1322_v7 = vpop.permute.xlu0 %1321  ;;  %v1419_v38 = vrot.slane %v1283_v39, 3  ;;  %v1490_v55 = vsel %vm1466_vm12, %v1487_v48, %v1420_v42  ;;  %v1435_v2 = vrot.slane %v1301_v8, 5 }
 0x2b1   : > { %v1488_v13 = vsel %vm1466_vm12, %v1485_v62, %v1418_v57 }
 0x2b2   : > { %v2187_v47 = vpop.permute.xlu1 %2186  ;;  %v1489_v46 = vsel %vm1466_vm12, %v1486_v49, %v1419_v38  ;;  %v1491_v24 = vsel %vm287_vm3, %v1488_v13, %v1427_v0 }
 0x2b3   : > { %v2188_v36 = vunpack.i.l.bf16 %v2187_v47  ;;  %v2189_v16 = vunpack.i.h.bf16 %v2187_v47  ;;  %v1494_v53 = vsel %vm277_vm2, %v1491_v24, %v1435_v2 }
 0x2b4   : > { %v1307_v5 = vpop.permute.xlu0 %1306 }
 0x2b5   : > { %v1302_v11 = vsel %vm303_vm4, %v2184_v40, %v2188_v36 }
 0x2b6   : > { %v1303_v10 = vsel %vm1139_vm15, %v1302_v11, %v1295_v30  ;;  %v1309_v50 = vsel %vm1139_vm15, %v1302_v11, %v1307_v5  ;;  %v2192_v15 = vpop.permute.xlu1 %2191  ;;  %v1976_v11 = vld [vmem:[%s3275_s4] ss:$0 sm:$0xff] }
 0x2b7   : > { %v2194_v17 = vunpack.i.h.bf16 %v2192_v15  ;;  %v2193_v3 = vunpack.i.l.bf16 %v2192_v15  ;;  %v1428_v19 = vrot.slane %v1303_v10, 4  ;;  %v1436_v20 = vrot.slane %v1309_v50, 5 }
 0x2b8   : > { %v1191_v23 = vpop.permute.xlu0 %1190 }
 0x2b9   : > { %v1335_v51 = vsel %vm1136_vm14, %v3040_v6, %v2194_v17  ;;  %v1336_v22 = vsel %vm303_vm4, %v2194_v17, %v2189_v16  ;;  %v1327_v63 = vsel %vm1136_vm14, %v3040_v6, %v2193_v3  ;;  %v1328_v12 = vsel %vm303_vm4, %v2193_v3, %v2189_v16  ;;  %v1979_v16 = vld [vmem:[%s3275_s4 + $0x1] ss:$0 sm:$0xff] }
 0x2ba   : > { %v1329_v56 = vsel %vm1139_vm15, %v1328_v12, %v1322_v7  ;;  %v1444_v25 = vrot.slane %v1327_v63, 6  ;;  %v1196_v27 = vsel %vm1141_vm10, %v3077_v18, %v1191_v23  ;;  %v1202_v28 = vsel %vm1141_vm10, %v3080_v21, %v1191_v23  ;;  %v1299_v29 = vpop.permute.xlu1 %1298  ;;  %v1778_v63 = vld [vmem:[%s3276_s5 + $0x8] sm:$0xff]  ;;  %v1777_v12 = vld [vmem:[%s3276_s5] sm:$0xff] }
 0x2bb   : > { %v1369_v32 = vrot.slane %v1196_v27, 4  ;;  %v1377_v35 = vrot.slane %v1202_v28, 5  ;;  %v1304_v34 = vsel %vm1141_vm10, %v1295_v30, %v1299_v29  ;;  %v1310_v9 = vsel %vm1141_vm10, %v1307_v5, %v1299_v29 }
 0x2bc   : > { %v1429_v37 = vrot.slane %v1304_v34, 4  ;;  %v1437_v6 = vrot.slane %v1310_v9, 5  ;;  %v1217_v4 = vpop.permute.xlu0 %1216  ;;  %v1337_v40 = vsel %vm1139_vm15, %v1336_v22, %v1322_v7  ;;  %v1445_v41 = vrot.slane %v1329_v56, 6  ;;  %v1779_v22 = vld [vmem:[%s3276_s5 + $0x10] sm:$0xff] }
 0x2bd   : > { %v1472_v14 = vsel %vm287_vm3, %v3062_v59, %v1369_v32  ;;  %v1222_v18 = vsel %vm1141_vm10, %v3099_v52, %v1217_v4  ;;  %v1453_v21 = vrot.slane %v1337_v40, 7  ;;  %v1492_v43 = vsel %vm287_vm3, %v1489_v46, %v1428_v19  ;;  %v1980_v19 = vld [vmem:[%s3275_s4 + $0x2] ss:$0 sm:$0xff] }
 0x2be   : > { %v1493_v44 = vsel %vm287_vm3, %v1490_v55, %v1429_v37  ;;  %v1386_v30 = vrot.slane %v1222_v18, 6  ;;  %v1394_v33 = vrot.slane %v1222_v18, 7  ;;  %v1325_v45 = vpop.permute.xlu1 %1324  ;;  %v1475_v26 = vsel %vm277_vm2, %v1472_v14, %v1377_v35 }
 0x2bf   : > { %v1330_v54 = vsel %vm1141_vm10, %v1322_v7, %v1325_v45  ;;  %v1495_v8 = vsel %vm277_vm2, %v1492_v43, %v1436_v20  ;;  %v1452_v59 = vrot.slane %v1335_v51, 7  ;;  %v1497_v60 = vsel %vm267_vm0, %v1494_v53, %v1444_v25  ;;  %v1780_v51 = vld [vmem:[%s3276_s5 + $0x18] sm:$0xff] }
 0x2c0   : > { %v1446_v39 = vrot.slane %v1330_v54, 6  ;;  %v1454_v57 = vrot.slane %v1330_v54, 7  ;;  %v1498_v52 = vsel %vm267_vm0, %v1495_v8, %v1445_v41  ;;  %v1496_v58 = vsel %vm277_vm2, %v1493_v44, %v1437_v6 }
 0x2c1   : > { %v1501_v31 = vsel %vm257_vm1, %v1498_v52, %v1453_v21  ;;  %v1478_v42 = vsel %vm267_vm0, %v1475_v26, %v1386_v30  ;;  %v1500_v7 = vsel %vm257_vm1, %v1497_v60, %v1452_v59  ;;  %vm2213_vm14 = vmmov 0  }
 0x2c2   : > { %v1499_v47 = vsel %vm267_vm0, %v1496_v58, %v1446_v39  ;;  %1629 = vmatprep.mubr.f32.mxu1 %v1501_v31  ;;  %v1481_v61 = vsel %vm257_vm1, %v1478_v42, %v1394_v33  ;;  %vm1740_vm15 = vcmask 252928  }
 0x2c3   : > { %1630 = vmatmul.mubr.f32.gmra.mxu1 %v1500_v7  ;;  %v1502_v48 = vsel %vm257_vm1, %v1499_v47, %v1454_v57 }
 0x2c4   : > { %2069 = vmatprep.mubr.msk.f32.mxu1 %vm1553_vm9, %v1481_v61 }
 0x2c7   : > { %2070 = vmatmul.mubr.msk.f32.vlgmr.msra.gmra.mxu1 %vm1553_vm9, %v1502_v48 }
 0x2c8   : > { %2073 = vmatpush3.msra.mxu1 %v1780_v51  ;;  %2080 = vmatprep.mubr.msk.f32.mxu1 %vm2213_vm14, %v2203_v1 }
 0x2c9   : > { %2074 = vmatprep.subr.mxu1 %v2203_v1 }
 0x2ca   : > { %2075 = vmatpush3.msra.mxu1 %v1779_v22 }
 0x2cb   : > { %2076 = vmatprep.subr.mxu1 %v2203_v1 }
 0x2cc   : > { %2077 = vmatpush3.msra.mxu1 %v1778_v63 }
 0x2cd   : > { %2078 = vmatprep.subr.mxu1 %v2203_v1 }
 0x2ce   : > { %2079 = vmatpush3.msra.mxu1 %v1777_v12 }
 0x350   : > { %v2017_v36 = vpop.f32.mrf.mxu1 }
 0x352   : > { %v2018_v62 = vpop.f32.mrf.mxu1 }
 0x353   : > { %v2019_v38 = vadd.f32 %v2018_v62, %v2017_v36 }
 0x355   : > { %v1627_v50 = vadd.f32 %v2019_v38, %v1976_v11 }
 0x383   : > { %v2020_v0 = vpop.f32.mrf.mxu1 }
 0x385   : > { %v2021_v5 = vpop.f32.mrf.mxu1 }
 0x386   : > { %v2022_v13 = vadd.f32 %v2021_v5, %v2020_v0 }
 0x387   : > { %v2071_v49 = vpop.f32.mrf.mxu1 }
 0x388   : > { %v1632_v10 = vadd.f32 %v2022_v13, %v1976_v11 }
 0x389   : > { %v1701_v15 = vpop.f32.mrf.mxu1 }
 0x38a   : > { %v1707_v55 = vadd.f32 %v2071_v49, %v1632_v10  ;;  %v1702_v2 = vadd.f32 %v1701_v15, %v1627_v50 }
 0x38c   : > { %v1711_v17 = vmax.f32 %v1707_v55, 0.0  ;;  %v1710_v3 = vmax.f32 %v1702_v2, 0.0 }
 0x38e   : > { %v1718_v20 = vmul.f32 %v1979_v16, %v1711_v17  ;;  %v1717_v23 = vmul.f32 %v1979_v16, %v1710_v3 }
 0x390   : > { %v1725_v46 = vadd.f32 %v1980_v19, %v1718_v20  ;;  %v1724_v24 = vadd.f32 %v1980_v19, %v1717_v23 }
 0x392   : > { %1730 = vrot.lane.b32.xlu1 %v1725_v46, %s2208_s20  ;;  %1728 = vrot.lane.b32.xlu0 %v1724_v24, %s2208_s20 }
 0x396   : > { %1736 = vrot.lane.b32.xlu1 %v1725_v46, %s2214_s15  ;;  %1734 = vrot.lane.b32.xlu0 %v1724_v24, %s2214_s15 }
 0x404   : > { %v1731_v56 = vpop.permute.xlu1 %1730  ;;  %v1729_v25 = vpop.permute.xlu0 %1728 }
 0x408   : > { %v1737_v27 = vpop.permute.xlu1 %1736  ;;  %v1735_v28 = vpop.permute.xlu0 %1734 }
 0x409   : > { %v1742_v29 = vsel %vm1740_vm15, %v1731_v56, %v1737_v27  ;;  %v1741_v32 = vsel %vm1740_vm15, %v1729_v25, %v1735_v28 }
 0x40a   : > { %v1744_v35 = vmax.f32 %v1725_v46, %v1742_v29  ;;  %v1743_v34 = vmax.f32 %v1724_v24, %v1741_v32 }
 0x40c   : > { %v1748_v9 = vrot.slane %v1744_v35, 1  ;;  %v1747_v37 = vrot.slane %v1743_v34, 1 }
 0x40e   : > { %v1749_v6 = vsel %vm257_vm1, %v1747_v37, %v1748_v9  ;;  %v1753_v40 = vmax.f32 %v1744_v35, %v1748_v9 }
 0x40f   : > { %v1752_v4 = vmax.f32 %v1743_v34, %v1749_v6 }
 0x410   : > { %v1762_v21 = vrot.slane %v1753_v40, 4  ;;  %v1764_v44 = vrot.slane %v1753_v40, 5  ;;  %v1766_v33 = vrot.slane %v1753_v40, 6  ;;  %v1768_v53 = vrot.slane %v1753_v40, 7 }
 0x411   : > { %v1755_v41 = vrot.slane %v1752_v4, 1  ;;  %v1757_v14 = vrot.slane %v1752_v4, 2  ;;  %v1759_v18 = vrot.slane %v1752_v4, 3 }
 0x413   : > { %v1770_v1 = vsel %vm1458_vm11, %v1752_v4, %v1755_v41 }
 0x414   : > { %v1771_v43 = vsel %vm1462_vm13, %v1770_v1, %v1757_v14 }
 0x415   : > { %v1772_v30 = vsel %vm1466_vm12, %v1771_v43, %v1759_v18 }
 0x416   : > { %v1773_v45 = vsel %vm287_vm3, %v1772_v30, %v1762_v21 }
 0x417   : > { %v1774_v26 = vsel %vm277_vm2, %v1773_v45, %v1764_v44 }
 0x418   : > { %v1775_v54 = vsel %vm267_vm0, %v1774_v26, %v1766_v33  ;;  %vm1887_vm0 = vcmask 654336  }
 0x419   : > { %v1776_v8 = vsel %vm257_vm1, %v1775_v54, %v1768_v53 }
 0x41a   : > { %2081 = vmatmul.mubr.msk.f32.vlgmr.msra.gmra.mxu1 %vm1141_vm10, %v1776_v8 }
 0x4da   : > { %v1850_v59 = vpop.f32.mrf.mxu1 }
 0x4db   : > { %v1859_v39 = vrot.slane %v1850_v59, 2  ;;  %v1855_v57 = vrot.slane %v1850_v59, 1  ;;  %v1867_v60 = vrot.slane %v1850_v59, 4  ;;  %v1863_v58 = vrot.slane %v1850_v59, 3 }
 0x4dc   : > { %v2082_v52 = vpop.f32.mrf.mxu1  ;;  %v1875_v31 = vrot.slane %v1850_v59, 6  ;;  %v1871_v42 = vrot.slane %v1850_v59, 5  ;;  %v1879_v47 = vrot.slane %v1850_v59, 7 }
 0x4dd   : > { %1860 = vrot.lane.b32.xlu1 %v1859_v39, %s2211_s26  ;;  %1856 = vrot.lane.b32.xlu0 %v1855_v57, %s2206_s24  ;;  %s252_s24 = scalar_lea.vmem %s3277_s6, %s3281_s22 }
 0x4e1   : > { %1868 = vrot.lane.b32.xlu1 %v1867_v60, %s2207_s27  ;;  %1864 = vrot.lane.b32.xlu0 %v1863_v58, %s2205_s19 }
 0x4e5   : > { %1876 = vrot.lane.b32.xlu1 %v1875_v31, %s2204_s16  ;;  %1872 = vrot.lane.b32.xlu0 %v1871_v42, %s2215_s28 }
 0x4e9   : > { %1880 = vrot.lane.b32.xlu0 %v1879_v47, %s2216_s29 }
 0x54f   : > { %v1861_v7 = vpop.permute.xlu1 %1860  ;;  %v1857_v61 = vpop.permute.xlu0 %1856 }
 0x550   : > { %v1883_v48 = vsel %vm303_vm4, %v1850_v59, %v1857_v61 }
 0x551   : > { %v1884_v62 = vsel %vm1141_vm10, %v1883_v48, %v1861_v7 }
 0x553   : > { %v1869_v36 = vpop.permute.xlu1 %1868  ;;  %v1865_v0 = vpop.permute.xlu0 %1864 }
 0x554   : > { %v1885_v38 = vsel %vm297_vm5, %v1884_v62, %v1865_v0 }
 0x555   : > { %v1886_v5 = vsel %vm306_vm6, %v1885_v38, %v1869_v36 }
 0x557   : > { %v1873_v11 = vpop.permute.xlu0 %1872  ;;  %v1877_v13 = vpop.permute.xlu1 %1876 }
 0x558   : > { %v1888_v49 = vsel %vm1887_vm0, %v1886_v5, %v1873_v11 }
 0x559   : > { %v1889_v10 = vsel %vm300_vm7, %v1888_v49, %v1877_v13 }
 0x55b   : > { %v1881_v50 = vpop.permute.xlu0 %1880 }
 0x55c   : > { %v1890_v15 = vsel %vm747_vm8, %v1889_v10, %v1881_v50 }
 0x55d   : > { %1891 = vst [vmem:[%s252_s24] sm:$0x1] %v1890_v15 }
 0x55e PF: > { %s16_s21 = sadd.s32 1, %s2201_s21  }
 0x55f   : > { %p13_p5 = scmp.ge.s32.totalorder %s16_s21, 4  }
 0x561   :  { %15 = sbr.rel (!%p13_p5) target bundleno = 1 (0x1), region = 81 }

</bundles_post_ra>
